<compile_context>
chip_gen: v6e
topology: v6e:2x2x1
jax: 0.10.0
libtpu: 0.0.40
codegen_flags: <defaults>
</compile_context>

<pallas_src>
import functools

import jax
import jax.numpy as jnp
from jax.experimental import pallas as pl
from jax.experimental.pallas import tpu as pltpu

EPS = 1e-5


def _round_up(x, m):
    return ((x + m - 1) // m) * m


def _choose_tile_c(C, target_steps=4):
    """Pick a channel tile giving ~target_steps grid steps.

    >=2 steps per TensorCore on dual-TC v7x so DMA overlaps compute; 4 steps
    is also a reasonable pipeline depth for single-TC v6e / v5e.  Avoids an
    odd grid > 1 (which would split 2/1 across the two v7x cores).
    """
    if C % 8 != 0:
        return C                      # single full block (full-dim exemption)
    tile_c = min(_round_up(pl.cdiv(C, target_steps), 8), C)
    grid = pl.cdiv(C, tile_c)
    if grid > 1 and grid % 2 == 1:    # avoid uneven 2-TC split
        tile_c = min(_round_up(pl.cdiv(C, grid + 1), 8), C)
    return tile_c


def _bn_add_relu_kernel(x_ref, res_ref, o_ref):
    """Fast path: identity affine (weight=1, bias=0)."""
    x = x_ref[...]                                   # (tc, L) f32
    r = res_ref[...]                                 # (tc, L) f32
    inv_l = 1.0 / x.shape[-1]
    # single pass over x for both reductions (they overlap on the XLU)
    s1 = jnp.sum(x, axis=-1, keepdims=True)          # (tc, 1)
    s2 = jnp.sum(x * x, axis=-1, keepdims=True)      # (tc, 1)
    mean = s1 * inv_l
    var = jnp.maximum(s2 * inv_l - mean * mean, 0.0)  # biased var, clamped
    inv_std = jax.lax.rsqrt(var + EPS)               # EUP
    scale = inv_std                                  # (tc, 1)
    shift = -mean * inv_std                          # (tc, 1)
    # full-tile path: mul + add + add + max
    o_ref[...] = jnp.maximum(x * scale + shift + r, 0.0).astype(o_ref.dtype)


def _bn_affine_add_relu_kernel(x_ref, res_ref, gamma_ref, beta_ref, o_ref,
                               *, tile_c):
    """General path: affine folded into per-channel scale/shift vectors.

    gamma_ref / beta_ref hold the FULL (padded) channel vectors, fetched once
    per kernel; slice this block's rows in-kernel.
    """
    i = pl.program_id(0)
    row0 = pl.multiple_of(i * tile_c, 8)
    g = gamma_ref[pl.ds(row0, tile_c), :]            # (tc, 1)
    b = beta_ref[pl.ds(row0, tile_c), :]             # (tc, 1)

    x = x_ref[...]
    r = res_ref[...]
    inv_l = 1.0 / x.shape[-1]
    s1 = jnp.sum(x, axis=-1, keepdims=True)
    s2 = jnp.sum(x * x, axis=-1, keepdims=True)
    mean = s1 * inv_l
    var = jnp.maximum(s2 * inv_l - mean * mean, 0.0)
    inv_std = jax.lax.rsqrt(var + EPS)
    scale = inv_std * g                              # tiny (tc,1) VPU work
    shift = b - mean * scale
    o_ref[...] = jnp.maximum(x * scale + shift + r, 0.0).astype(o_ref.dtype)


def batchnorm_add_relu(x116, x109, gamma=None, beta=None, *,
                       tile_c=None, donate_residual=False):
    """x116, x109: (N, C, H, W) float32.  Returns (N, C, H, W) float32."""
    N, C, H, W = x116.shape
    L = N * H * W

    if tile_c is None:
        tile_c = _choose_tile_c(C)
    if tile_c % 8 != 0 and tile_c != C:
        tile_c = C
    grid_c = pl.cdiv(C, tile_c)        # partial last block is fine (masked)

    # NCHW -> (C, N*H*W).  For N == 1 this is a pure relabeling (no HBM copy).
    # TODO(synk): for N > 1 keep the native (N, C, H*W) layout and accumulate
    # per-channel sum / sum-of-squares over the batch axis inside the kernel
    # instead of paying these wrapper transposes as extra full-array HBM passes.
    x_cl = jnp.transpose(x116, (1, 0, 2, 3)).reshape(C, L)
    r_cl = jnp.transpose(x109, (1, 0, 2, 3)).reshape(C, L)

    has_affine = (gamma is not None) or (beta is not None)

    in_specs = [
        pl.BlockSpec((tile_c, L), lambda i: (i, 0)),
        pl.BlockSpec((tile_c, L), lambda i: (i, 0)),
    ]
    inputs = [x_cl, r_cl]

    if has_affine:
        C_pad = grid_c * tile_c
        g = jnp.ones((C,), jnp.float32) if gamma is None else gamma.astype(jnp.float32)
        b = jnp.zeros((C,), jnp.float32) if beta is None else beta.astype(jnp.float32)
        g = jnp.pad(g, (0, C_pad - C)).reshape(C_pad, 1)
        b = jnp.pad(b, (0, C_pad - C)).reshape(C_pad, 1)
        # full-extent vectors: constant index_map -> fetched once, reused.
        in_specs += [
            pl.BlockSpec((C_pad, 1), lambda i: (0, 0)),
            pl.BlockSpec((C_pad, 1), lambda i: (0, 0)),
        ]
        inputs += [g, b]
        kernel = functools.partial(_bn_affine_add_relu_kernel, tile_c=tile_c)
    else:
        kernel = _bn_add_relu_kernel

    # ---- VMEM budgeting (generation aware) ---------------------------------
    lanes = _round_up(L, 128)
    block_bytes = tile_c * lanes * 4
    est_vmem = 2 * 3 * block_bytes                 # 3 tiled arrays, double-buffered
    if has_affine:
        est_vmem += 2 * 2 * grid_c * tile_c * 128 * 4

    cp_kwargs = dict(dimension_semantics=("parallel",))
    if est_vmem > 12 * 1024 * 1024:                # v5e scoped default is 16 MiB
        try:
            phys_vmem = int(pltpu.get_tpu_info().vmem_capacity_bytes)
        except Exception:
            phys_vmem = 64 * 1024 * 1024           # v7x lower bound
        cap = max(phys_vmem - (8 << 20), 16 << 20)
        cp_kwargs["vmem_limit_bytes"] = int(min(est_vmem + (4 << 20), cap))

    cost = pl.CostEstimate(
        flops=9 * C * L,             # stats + normalize + add + relu
        transcendentals=C,           # one rsqrt per channel
        bytes_accessed=12 * C * L,   # 2 f32 reads + 1 f32 write
    )

    alias_kwargs = {"input_output_aliases": {1: 0}} if donate_residual else {}

    out_cl = pl.pallas_call(
        kernel,
        out_shape=jax.ShapeDtypeStruct((C, L), jnp.float32),
        grid_spec=pltpu.PrefetchScalarGridSpec(
            num_scalar_prefetch=0,
            grid=(grid_c,),
            in_specs=in_specs,
            out_specs=pl.BlockSpec((tile_c, L), lambda i: (i, 0)),
        ),
        compiler_params=pltpu.CompilerParams(**cp_kwargs),
        cost_estimate=cost,
        **alias_kwargs,
    )(*inputs)

    # (C, N*H*W) -> (N, C, H, W)
    return jnp.transpose(out_cl.reshape(C, N, H, W), (1, 0, 2, 3))


def reference(x116, x109, gamma, beta):
    mean = jnp.mean(x116, axis=(0, 2, 3), keepdims=True)
    var = jnp.mean((x116 - mean) ** 2, axis=(0, 2, 3), keepdims=True)
    y = (x116 - mean) * jax.lax.rsqrt(var + EPS)
    y = y * gamma.reshape(1, -1, 1, 1) + beta.reshape(1, -1, 1, 1)
    return jnp.maximum(x109 + y, 0.0)


if __name__ == "__main__":
    N, C, H, W = 1, 720, 14, 14  # shapes implied by the module

    key = jax.random.PRNGKey(0)
    k1, k2 = jax.random.split(key)
    x116 = jax.random.normal(k1, (N, C, H, W), dtype=jnp.float32)
    x109 = jax.random.normal(k2, (N, C, H, W), dtype=jnp.float32)

    # PyTorch BatchNorm2d default init: weight = 1, bias = 0 -> identity
    # affine, so the fast path (no gamma/beta operands) is exact.
    gamma = jnp.ones((C,), dtype=jnp.float32)
    beta = jnp.zeros((C,), dtype=jnp.float32)

    out = jax.block_until_ready(batchnorm_add_relu(x116, x109))
    ref = reference(x116, x109, gamma, beta)
    assert out.shape == (N, C, H, W)
    assert jnp.allclose(out, ref, atol=1e-4, rtol=1e-4)

    # general affine path + aliased output, once for coverage
    out2 = jax.block_until_ready(
        batchnorm_add_relu(x116, x109, gamma=gamma, beta=beta,
                           donate_residual=True))
    assert jnp.allclose(out2, ref, atol=1e-4, rtol=1e-4)

    print("KERNEL_OK")
</pallas_src>

<mosaic_0001>
module attributes {stable_mosaic.version = 11 : i64} {
  func.func @_bn_add_relu_kernel(%arg0: i32, %arg1: memref<184x196xf32, #tpu.memory_space<vmem>>, %arg2: memref<184x196xf32, #tpu.memory_space<vmem>>, %arg3: memref<184x196xf32, #tpu.memory_space<vmem>>) attributes {dimension_semantics = [#tpu.dimension_semantics<parallel>], iteration_bounds = array<i64: 4>, scalar_prefetch = 0 : i64, scratch_operands = 0 : i64, tpu.core_type = #tpu.core_type<tc>, window_params = [{transform_indices = @transform_0, window_bounds = array<i64: 184, 196>}, {transform_indices = @transform_1, window_bounds = array<i64: 184, 196>}, {transform_indices = @transform_2, window_bounds = array<i64: 184, 196>}]} {
    %c0 = arith.constant 0 : index
    %c0_0 = arith.constant 0 : index
    %0 = vector.load %arg1[%c0, %c0_0] : memref<184x196xf32, #tpu.memory_space<vmem>>, vector<184x196xf32>
    %c0_1 = arith.constant 0 : index
    %c0_2 = arith.constant 0 : index
    %1 = vector.load %arg2[%c0_1, %c0_2] : memref<184x196xf32, #tpu.memory_space<vmem>>, vector<184x196xf32>
    %cst = arith.constant dense<0.000000e+00> : vector<184xf32>
    %2 = vector.multi_reduction <add>, %0, %cst [1] : vector<184x196xf32> to vector<184xf32>
    %3 = vector.shape_cast %2 : vector<184xf32> to vector<184x1xf32>
    %4 = arith.mulf %0, %0 : vector<184x196xf32>
    %cst_3 = arith.constant dense<0.000000e+00> : vector<184xf32>
    %5 = vector.multi_reduction <add>, %4, %cst_3 [1] : vector<184x196xf32> to vector<184xf32>
    %6 = vector.shape_cast %5 : vector<184xf32> to vector<184x1xf32>
    %cst_4 = arith.constant 0.00510204071 : f32
    %7 = vector.broadcast %cst_4 : f32 to vector<184x1xf32>
    %8 = arith.mulf %3, %7 : vector<184x1xf32>
    %cst_5 = arith.constant 0.00510204071 : f32
    %9 = vector.broadcast %cst_5 : f32 to vector<184x1xf32>
    %10 = arith.mulf %6, %9 : vector<184x1xf32>
    %11 = arith.mulf %8, %8 : vector<184x1xf32>
    %12 = arith.subf %10, %11 : vector<184x1xf32>
    %cst_6 = arith.constant 0.000000e+00 : f32
    %13 = vector.broadcast %cst_6 : f32 to vector<184x1xf32>
    %14 = arith.maximumf %12, %13 : vector<184x1xf32>
    %cst_7 = arith.constant 9.99999974E-6 : f32
    %15 = vector.broadcast %cst_7 : f32 to vector<184x1xf32>
    %16 = arith.addf %14, %15 : vector<184x1xf32>
    %17 = math.rsqrt %16 : vector<184x1xf32>
    %cst_8 = arith.constant 0.000000e+00 : f32
    %18 = vector.broadcast %cst_8 : f32 to vector<184x1xf32>
    %19 = arith.subf %18, %8 : vector<184x1xf32>
    %20 = arith.mulf %19, %17 : vector<184x1xf32>
    %21 = vector.broadcast %17 : vector<184x1xf32> to vector<184x196xf32>
    %22 = arith.mulf %0, %21 : vector<184x196xf32>
    %23 = vector.broadcast %20 : vector<184x1xf32> to vector<184x196xf32>
    %24 = arith.addf %22, %23 : vector<184x196xf32>
    %25 = arith.addf %24, %1 : vector<184x196xf32>
    %cst_9 = arith.constant 0.000000e+00 : f32
    %26 = vector.broadcast %cst_9 : f32 to vector<184x196xf32>
    %27 = arith.maximumf %25, %26 : vector<184x196xf32>
    %c0_10 = arith.constant 0 : index
    %c0_11 = arith.constant 0 : index
    %28 = vector.load %arg3[%c0_10, %c0_11] : memref<184x196xf32, #tpu.memory_space<vmem>>, vector<184x196xf32>
    tpu.vector_store %arg3[%c0_10, %c0_11], %27 {strides = array<i32>} : memref<184x196xf32, #tpu.memory_space<vmem>>, vector<184x196xf32>,
    return
  }
  func.func @transform_0(%arg0: i32) -> (i32, i32) {
    %c0_i32 = arith.constant 0 : i32
    %c0_i32_0 = arith.constant 0 : i32
    return %arg0, %c0_i32 : i32, i32
  }
  func.func @transform_1(%arg0: i32) -> (i32, i32) {
    %c0_i32 = arith.constant 0 : i32
    %c0_i32_0 = arith.constant 0 : i32
    return %arg0, %c0_i32 : i32, i32
  }
  func.func @transform_2(%arg0: i32) -> (i32, i32) {
    %c0_i32 = arith.constant 0 : i32
    %c0_i32_0 = arith.constant 0 : i32
    return %arg0, %c0_i32 : i32, i32
  }
}

</mosaic_0001>

<bundles_post_ra>
// kernel: tpu_custom_call.1
= control target key start
LH: loop header
LB: loop body
LE: loop exit
PB: predicated region body
PF: predicated region fallthrough
CT: control target
= control target key end

     0   :  { %s1544_s9 = smov 0   ;;  %s1546_s10 = smov 0   ;;  %s2523_s0 = inlined_call_operand.vmem [shape: f32[720,196], index: 0, kind: input, shape index: {}]   ;;  %s2524_s1 = inlined_call_operand.vmem [shape: f32[720,196], index: 1, kind: input, shape index: {}]   ;;  %s2525_s2 = inlined_call_operand.vmem [shape: f32[720,196], index: 2, kind: output, shape index: {}]  }
   0x1   :  { %s1548_s11 = smov 0  }
   0x2 LB: > { %s1557_s12 = sadd.s32 4294967295, %s1495_s11   ;;  %s1559_s13 = sadd.s32 1, %s1495_s11   ;;  %s1495_s11 = sphi %s1548_s11, %s2585_s11   ;;  %s1491_s10 = sphi %s1546_s10, %s2584_s10   ;;  %s1487_s9 = sphi %s1544_s9, %s2583_s9  }
   0x3   : > { %s68_s14 = ssub.s32 %s1495_s11, %s1559_s13  ;;  %s71_s15 = sadd.s32 1, %s1491_s10 }
   0x4   : > { %p69_p0 = scmp.eq.s32.totalorder %s68_s14, 0  ;;  %p81_p1 = scmp.ne.s32.totalorder %s1491_s10, %s1487_s9 }
   0x5   : > { %p82_p2 = scmp.eq.s32.totalorder %s1557_s12, 3  ;;  %p1248_p3 = scmp.ge.s32.totalorder %s1495_s11, 1 }
   0x6   : > { %s1567_s16 = scalar_select %p69_p0, %s1491_s10, %s71_s15  }
   0x7   : > { %p1569_p4 = por %p82_p2, %p81_p1  ;;  %p146_p5 = scmp.lt.s32.totalorder %s1495_s11, 5 }
   0x9   : > { %p147_p6 = pnand %p1248_p3, %p146_p5 }
   0xb   : > { %150 = sbr.rel (%p147_p6) target bundleno = 394 (0x18a), region = 28 }
  0x10   : > { %s1574_s18 = smul.u32 23, %s1557_s12  ;;  %vm316_vm0 = vcmask 556032   ;;  %s181_s27 = sand.u32 1, %s1487_s9  }
  0x11   : > { %s2094_s28 = smul.u32 368, %s181_s27 }
  0x12   : > { %p190_p7 = scmp.lt.s32.totalorder %s1574_s18, 89  ;;  %s992_s30 = ssub.s32 (%p1569_p4), 90, %s1574_s18 }
  0x13   : > { %s2127_s29 = scalar_lea.vmem [#allocation2], %s2094_s28   ;;  %s1272_s3 = smul.u32 (%p1569_p4), 368, %s1557_s12 }
  0x14   : > { %s1578_s19 = scalar_select %p190_p7, %s1574_s18, 89 }
  0x15   : > { %p993_p8 = scmp.lt.s32.totalorder (%p1569_p4), %s992_s30, 23  ;;  %s2357_s6 = scalar_lea.vmem (%p1569_p4), %s2525_s2, %s1272_s3  }
  0x16   : > { %s1267_s20 = sshll.u32 %s1578_s19, 4 }
  0x17   : > { %s1586_s23 = scalar_lea.vmem %s2523_s0, %s1267_s20  ;;  %s2080_s26 = scalar_lea.vmem %s2524_s1, %s1267_s20 }
  0x18   : > { %v1589_v0 = vld [vmem:[%s1586_s23 + $0x20] sm:$0xff]  ;;  %v1592_v1 = vld [vmem:[%s1586_s23 + $0x28] sm:$0xff]  ;;  %v1603_v5 = vld [vmem:[%s1586_s23 + $0x30] sm:$0xff] }
  0x19   : > { %v1595_v2 = vld [vmem:[%s1586_s23] sm:$0xff]  ;;  %v325_v3 = vsel %vm316_vm0, %v1592_v1, 0.0  ;;  %v1600_v4 = vld [vmem:[%s1586_s23 + $0x8] sm:$0xff]  ;;  %v1606_v6 = vld [vmem:[%s1586_s23 + $0x38] sm:$0xff] }
  0x1a   : > { %v326_v7 = vadd.f32 %v325_v3, %v1589_v0  ;;  %v317_v8 = vsel %vm316_vm0, %v1600_v4, 0.0  ;;  %v329_v9 = vsel %vm316_vm0, %v1606_v6, 0.0  ;;  %v1614_v10 = vld [vmem:[%s1586_s23 + $0x10] sm:$0xff]  ;;  %v1617_v11 = vld [vmem:[%s1586_s23 + $0x18] sm:$0xff]  ;;  %v1626_v15 = vld [vmem:[%s1586_s23 + $0x48] sm:$0xff] }
  0x1b   : > { %v318_v12 = vadd.f32 %v317_v8, %v1595_v2  ;;  %v321_v13 = vsel %vm316_vm0, %v1617_v11, 0.0  ;;  %v1623_v14 = vld [vmem:[%s1586_s23 + $0x58] sm:$0xff]  ;;  %v330_v16 = vadd.f32 %v329_v9, %v1603_v5  ;;  %v1631_v18 = vld [vmem:[%s1586_s23 + $0x50] sm:$0xff]  ;;  %v1636_v20 = vld [vmem:[%s1586_s23 + $0x40] sm:$0xff]  ;;  %v333_v21 = vsel %vm316_vm0, %v1626_v15, 0.0 }
  0x1c   : > { %327 = vadd.xlane.f32.xlu1 %v326_v7  ;;  %v322_v17 = vadd.f32 %v321_v13, %v1614_v10  ;;  %v337_v19 = vsel %vm316_vm0, %v1623_v14, 0.0  ;;  %v1641_v22 = vld [vmem:[%s1586_s23 + $0x78] sm:$0xff]  ;;  %v1644_v23 = vld [vmem:[%s1586_s23 + $0x68] sm:$0xff]  ;;  %v334_v25 = vadd.f32 %v333_v21, %v1636_v20  ;;  %v1649_v26 = vld [vmem:[%s1586_s23 + $0x70] sm:$0xff] }
  0x1d   : > { %319 = vadd.xlane.f32.xlu0 %v318_v12  ;;  %v338_v24 = vadd.f32 %v337_v19, %v1631_v18  ;;  %v345_v27 = vsel %vm316_vm0, %v1641_v22, 0.0  ;;  %v1654_v28 = vld [vmem:[%s1586_s23 + $0x60] sm:$0xff]  ;;  %v341_v29 = vsel %vm316_vm0, %v1644_v23, 0.0  ;;  %v1659_v30 = vld [vmem:[%s1586_s23 + $0x98] sm:$0xff]  ;;  %v1662_v31 = vld [vmem:[%s1586_s23 + $0x88] sm:$0xff] }
  0x1e   : > { %v346_v32 = vadd.f32 %v345_v27, %v1649_v26  ;;  %v342_v33 = vadd.f32 %v341_v29, %v1654_v28  ;;  %v1667_v34 = vld [vmem:[%s1586_s23 + $0x90] sm:$0xff]  ;;  %v353_v35 = vsel %vm316_vm0, %v1659_v30, 0.0  ;;  %v1672_v36 = vld [vmem:[%s1586_s23 + $0x80] sm:$0xff]  ;;  %v349_v37 = vsel %vm316_vm0, %v1662_v31, 0.0  ;;  %v1677_v38 = vld [vmem:[%s1586_s23 + $0xb8] sm:$0xff] }
  0x1f   : > { %v1680_v39 = vld [vmem:[%s1586_s23 + $0xa8] sm:$0xff]  ;;  %v354_v40 = vadd.f32 %v353_v35, %v1667_v34  ;;  %v350_v41 = vadd.f32 %v349_v37, %v1672_v36  ;;  %v1685_v42 = vld [vmem:[%s1586_s23 + $0xb0] sm:$0xff]  ;;  %v361_v43 = vsel %vm316_vm0, %v1677_v38, 0.0  ;;  %v1690_v44 = vld [vmem:[%s1586_s23 + $0xa0] sm:$0xff] }
  0x20   : > { %331 = vadd.xlane.f32.xlu1 %v330_v16  ;;  %v357_v45 = vsel %vm316_vm0, %v1680_v39, 0.0  ;;  %v1695_v46 = vld [vmem:[%s1586_s23 + $0xd8] sm:$0xff]  ;;  %v1698_v47 = vld [vmem:[%s1586_s23 + $0xc8] sm:$0xff]  ;;  %v362_v48 = vadd.f32 %v361_v43, %v1685_v42  ;;  %v1703_v50 = vld [vmem:[%s1586_s23 + $0xd0] sm:$0xff]  ;;  %v410_v43 = vmul.f32 %v1600_v4, %v1600_v4 }
  0x21   : > { %323 = vadd.xlane.f32.xlu0 %v322_v17  ;;  %v358_v49 = vadd.f32 %v357_v45, %v1690_v44  ;;  %v369_v51 = vsel %vm316_vm0, %v1695_v46, 0.0  ;;  %v1708_v52 = vld [vmem:[%s1586_s23 + $0xc0] sm:$0xff]  ;;  %v365_v53 = vsel %vm316_vm0, %v1698_v47, 0.0  ;;  %v1713_v54 = vld [vmem:[%s1586_s23 + $0xf8] sm:$0xff]  ;;  %v1716_v55 = vld [vmem:[%s1586_s23 + $0xe8] sm:$0xff] }
  0x22   : > { %v370_v56 = vadd.f32 %v369_v51, %v1703_v50  ;;  %v366_v57 = vadd.f32 %v365_v53, %v1708_v52  ;;  %v1721_v58 = vld [vmem:[%s1586_s23 + $0xf0] sm:$0xff]  ;;  %v377_v59 = vsel %vm316_vm0, %v1713_v54, 0.0  ;;  %v1726_v60 = vld [vmem:[%s1586_s23 + $0xe0] sm:$0xff]  ;;  %v373_v61 = vsel %vm316_vm0, %v1716_v55, 0.0  ;;  %v1731_v62 = vld [vmem:[%s1586_s23 + $0x118] sm:$0xff] }
  0x23   : > { %v1734_v63 = vld [vmem:[%s1586_s23 + $0x108] sm:$0xff]  ;;  %v378_v3 = vadd.f32 %v377_v59, %v1721_v58  ;;  %v374_v7 = vadd.f32 %v373_v61, %v1726_v60  ;;  %v1739_v8 = vld [vmem:[%s1586_s23 + $0x110] sm:$0xff]  ;;  %v385_v9 = vsel %vm316_vm0, %v1731_v62, 0.0  ;;  %v1744_v12 = vld [vmem:[%s1586_s23 + $0x100] sm:$0xff]  ;;  %v409_v53 = vmul.f32 %v1595_v2, %v1595_v2 }
  0x24   : > { %339 = vadd.xlane.f32.xlu1 %v338_v24  ;;  %v381_v13 = vsel %vm316_vm0, %v1734_v63, 0.0  ;;  %v1749_v16 = vld [vmem:[%s1586_s23 + $0x138] sm:$0xff]  ;;  %v1752_v17 = vld [vmem:[%s1586_s23 + $0x128] sm:$0xff]  ;;  %v386_v19 = vadd.f32 %v385_v9, %v1739_v8  ;;  %v1757_v24 = vld [vmem:[%s1586_s23 + $0x130] sm:$0xff]  ;;  %v414_v59 = vmul.f32 %v1592_v1, %v1592_v1 }
  0x25   : > { %335 = vadd.xlane.f32.xlu0 %v334_v25  ;;  %v382_v21 = vadd.f32 %v381_v13, %v1744_v12  ;;  %v393_v25 = vsel %vm316_vm0, %v1749_v16, 0.0  ;;  %v1762_v27 = vld [vmem:[%s1586_s23 + $0x120] sm:$0xff]  ;;  %v389_v29 = vsel %vm316_vm0, %v1752_v17, 0.0  ;;  %v413_v13 = vmul.f32 %v1589_v0, %v1589_v0 }
  0x26   : > { %v394_v35 = vadd.f32 %v393_v25, %v1757_v24  ;;  %v390_v37 = vadd.f32 %v389_v29, %v1762_v27  ;;  %v1782_v45 = vld [vmem:[%s1586_s23 + $0x140] sm:$0xff]  ;;  %v411_v25 = vmul.f32 %v1614_v10, %v1614_v10  ;;  %v418_v29 = vmul.f32 %v1626_v15, %v1626_v15 }
  0x27   : > { %v1797_v61 = vld [vmem:[%s1586_s23 + $0x160] sm:$0xff] }
  0x28   : > { %347 = vadd.xlane.f32.xlu1 %v346_v32  ;;  %v1767_v32 = vld [vmem:[%s1586_s23 + $0x158] sm:$0xff] }
  0x29   : > { %343 = vadd.xlane.f32.xlu0 %v342_v33  ;;  %v1770_v33 = vld [vmem:[%s1586_s23 + $0x148] sm:$0xff] }
  0x2c   : > { %355 = vadd.xlane.f32.xlu1 %v354_v40  ;;  %v1775_v40 = vld [vmem:[%s1586_s23 + $0x150] sm:$0xff] }
  0x2d   : > { %351 = vadd.xlane.f32.xlu0 %v350_v41  ;;  %v401_v41 = vsel %vm316_vm0, %v1767_v32, 0.0 }
  0x2e   : > { %v402_v51 = vadd.f32 %v401_v41, %v1775_v40 }
  0x30   : > { %363 = vadd.xlane.f32.xlu1 %v362_v48  ;;  %v397_v48 = vsel %vm316_vm0, %v1770_v33, 0.0 }
  0x31   : > { %359 = vadd.xlane.f32.xlu0 %v358_v49  ;;  %v1787_v49 = vld [vmem:[%s1586_s23 + $0x168] sm:$0xff] }
  0x34   : > { %371 = vadd.xlane.f32.xlu1 %v370_v56  ;;  %v398_v56 = vadd.f32 %v397_v48, %v1782_v45 }
  0x35   : > { %367 = vadd.xlane.f32.xlu0 %v366_v57  ;;  %v455_v57 = vsel %vm316_vm0, %v410_v43, 0.0  ;;  %v417_v43 = vmul.f32 %v1636_v20, %v1636_v20 }
  0x36   : > { %v456_v9 = vadd.f32 %v455_v57, %v409_v53  ;;  %v415_v53 = vmul.f32 %v1603_v5, %v1603_v5 }
  0x38   : > { %379 = vadd.xlane.f32.xlu1 %v378_v3  ;;  %v405_v3 = vsel %vm316_vm0, %v1787_v49, 0.0 }
  0x39   : > { %375 = vadd.xlane.f32.xlu0 %v374_v7  ;;  %v412_v7 = vmul.f32 %v1617_v11, %v1617_v11 }
  0x3c   : > { %387 = vadd.xlane.f32.xlu1 %v386_v19  ;;  %v406_v19 = vadd.f32 %v405_v3, %v1797_v61 }
  0x3d   : > { %383 = vadd.xlane.f32.xlu0 %v382_v21  ;;  %v463_v21 = vsel %vm316_vm0, %v414_v59, 0.0  ;;  %v420_v59 = vmul.f32 %v1623_v14, %v1623_v14 }
  0x3e   : > { %v464_v41 = vadd.f32 %v463_v21, %v413_v13  ;;  %v426_v21 = vmul.f32 %v1662_v31, %v1662_v31 }
  0x40   : > { %395 = vadd.xlane.f32.xlu1 %v394_v35  ;;  %v459_v35 = vsel %vm316_vm0, %v412_v7, 0.0  ;;  %v421_v7 = vmul.f32 %v1654_v28, %v1654_v28 }
  0x41   : > { %391 = vadd.xlane.f32.xlu0 %v390_v37  ;;  %v416_v37 = vmul.f32 %v1606_v6, %v1606_v6  ;;  %v460_v48 = vadd.f32 %v459_v35, %v411_v25  ;;  %v475_v25 = vsel %vm316_vm0, %v420_v59, 0.0  ;;  %v429_v59 = vmul.f32 %v1690_v44, %v1690_v44 }
  0x42   : > { %v433_v44 = vmul.f32 %v1708_v52, %v1708_v52  ;;  %v437_v52 = vmul.f32 %v1726_v60, %v1726_v60  ;;  %v441_v60 = vmul.f32 %v1744_v12, %v1744_v12  ;;  %v445_v12 = vmul.f32 %v1762_v27, %v1762_v27 }
  0x43   : > { %v467_v57 = vsel %vm316_vm0, %v416_v37, 0.0  ;;  %v425_v37 = vmul.f32 %v1672_v36, %v1672_v36  ;;  %v449_v27 = vmul.f32 %v1782_v45, %v1782_v45  ;;  %v453_v45 = vmul.f32 %v1797_v61, %v1797_v61 }
  0x44   : > { %403 = vadd.xlane.f32.xlu1 %v402_v51  ;;  %v471_v51 = vsel %vm316_vm0, %v418_v29, 0.0  ;;  %v424_v29 = vmul.f32 %v1641_v22, %v1641_v22 }
  0x45   : > { %399 = vadd.xlane.f32.xlu0 %v398_v56  ;;  %v422_v56 = vmul.f32 %v1644_v23, %v1644_v23  ;;  %v472_v3 = vadd.f32 %v471_v51, %v417_v43  ;;  %v487_v43 = vsel %vm316_vm0, %v426_v21, 0.0  ;;  %v430_v51 = vmul.f32 %v1680_v39, %v1680_v39 }
  0x46   : > { %v434_v39 = vmul.f32 %v1698_v47, %v1698_v47  ;;  %v438_v47 = vmul.f32 %v1716_v55, %v1716_v55  ;;  %v442_v55 = vmul.f32 %v1734_v63, %v1734_v63  ;;  %v446_v63 = vmul.f32 %v1752_v17, %v1752_v17 }
  0x47   : > { %v479_v13 = vsel %vm316_vm0, %v422_v56, 0.0  ;;  %v428_v56 = vmul.f32 %v1659_v30, %v1659_v30  ;;  %v432_v30 = vmul.f32 %v1677_v38, %v1677_v38  ;;  %v436_v38 = vmul.f32 %v1695_v46, %v1695_v46 }
  0x48   : > { %457 = vadd.xlane.f32.xlu1 %v456_v9  ;;  %v468_v9 = vadd.f32 %v467_v57, %v415_v53  ;;  %v480_v35 = vadd.f32 %v479_v13, %v421_v7  ;;  %v483_v53 = vsel %vm316_vm0, %v424_v29, 0.0  ;;  %v488_v57 = vadd.f32 %v487_v43, %v425_v37 }
  0x49   : > { %407 = vadd.xlane.f32.xlu0 %v406_v19  ;;  %v419_v19 = vmul.f32 %v1631_v18, %v1631_v18  ;;  %v495_v7 = vsel %vm316_vm0, %v430_v51, 0.0  ;;  %v491_v13 = vsel %vm316_vm0, %v428_v56, 0.0  ;;  %v499_v29 = vsel %vm316_vm0, %v432_v30, 0.0 }
  0x4a   : > { %v507_v43 = vsel %vm316_vm0, %v436_v38, 0.0  ;;  %v440_v46 = vmul.f32 %v1713_v54, %v1713_v54  ;;  %v444_v54 = vmul.f32 %v1731_v62, %v1731_v62  ;;  %v450_v17 = vmul.f32 %v1770_v33, %v1770_v33 }
  0x4b   : > { %v448_v62 = vmul.f32 %v1749_v16, %v1749_v16  ;;  %v454_v33 = vmul.f32 %v1787_v49, %v1787_v49  ;;  %v452_v16 = vmul.f32 %v1767_v32, %v1767_v32 }
  0x4c   : > { %465 = vadd.xlane.f32.xlu1 %v464_v41  ;;  %v476_v41 = vadd.f32 %v475_v25, %v419_v19  ;;  %v496_v19 = vadd.f32 %v495_v7, %v429_v59  ;;  %v503_v25 = vsel %vm316_vm0, %v434_v39, 0.0  ;;  %v515_v56 = vsel %vm316_vm0, %v440_v46, 0.0 }
  0x4d   : > { %461 = vadd.xlane.f32.xlu0 %v460_v48  ;;  %v423_v48 = vmul.f32 %v1649_v26, %v1649_v26  ;;  %v523_v7 = vsel %vm316_vm0, %v444_v54, 0.0  ;;  %v531_v30 = vsel %vm316_vm0, %v448_v62, 0.0 }
  0x50   : > { %473 = vadd.xlane.f32.xlu1 %v472_v3  ;;  %v484_v3 = vadd.f32 %v483_v53, %v423_v48  ;;  %v519_v53 = vsel %vm316_vm0, %v442_v55, 0.0 }
  0x51   : > { %469 = vadd.xlane.f32.xlu0 %v468_v9  ;;  %v427_v9 = vmul.f32 %v1667_v34, %v1667_v34  ;;  %v431_v34 = vmul.f32 %v1685_v42, %v1685_v42  ;;  %v435_v42 = vmul.f32 %v1703_v50, %v1703_v50  ;;  %v439_v50 = vmul.f32 %v1721_v58, %v1721_v58 }
  0x52   : > { %v443_v58 = vmul.f32 %v1739_v8, %v1739_v8  ;;  %v447_v8 = vmul.f32 %v1757_v24, %v1757_v24  ;;  %v451_v24 = vmul.f32 %v1775_v40, %v1775_v40 }
  0x53   : > { %v492_v21 = vadd.f32 %v491_v13, %v427_v9  ;;  %v500_v37 = vadd.f32 %v499_v29, %v431_v34  ;;  %v508_v51 = vadd.f32 %v507_v43, %v435_v42  ;;  %v516_v59 = vadd.f32 %v515_v56, %v439_v50 }
  0x54   : > { %481 = vadd.xlane.f32.xlu1 %v480_v35  ;;  %v504_v35 = vadd.f32 %v503_v25, %v433_v44  ;;  %v524_v39 = vadd.f32 %v523_v7, %v443_v58  ;;  %v535_v13 = vsel %vm316_vm0, %v450_v17, 0.0  ;;  %v532_v44 = vadd.f32 %v531_v30, %v447_v8 }
  0x55   : > { %477 = vadd.xlane.f32.xlu0 %v476_v41  ;;  %v511_v41 = vsel %vm316_vm0, %v438_v47, 0.0  ;;  %v539_v25 = vsel %vm316_vm0, %v452_v16, 0.0 }
  0x56   : > { %v512_v48 = vadd.f32 %v511_v41, %v437_v52  ;;  %v540_v34 = vadd.f32 %v539_v25, %v451_v24 }
  0x58   : > { %489 = vadd.xlane.f32.xlu1 %v488_v57  ;;  %v520_v57 = vadd.f32 %v519_v53, %v441_v60 }
  0x59   : > { %485 = vadd.xlane.f32.xlu0 %v484_v3  ;;  %v527_v3 = vsel %vm316_vm0, %v446_v63, 0.0 }
  0x5a   : > { %v528_v9 = vadd.f32 %v527_v3, %v445_v12 }
  0x5c   : > { %497 = vadd.xlane.f32.xlu1 %v496_v19  ;;  %v536_v19 = vadd.f32 %v535_v13, %v449_v27 }
  0x5d   : > { %493 = vadd.xlane.f32.xlu0 %v492_v21  ;;  %v543_v21 = vsel %vm316_vm0, %v454_v33, 0.0 }
  0x5e   : > { %v544_v49 = vadd.f32 %v543_v21, %v453_v45 }
  0x60   : > { %505 = vadd.xlane.f32.xlu1 %v504_v35 }
  0x61   : > { %501 = vadd.xlane.f32.xlu0 %v500_v37 }
  0x64   : > { %513 = vadd.xlane.f32.xlu1 %v512_v48 }
  0x65   : > { %509 = vadd.xlane.f32.xlu0 %v508_v51 }
  0x68   : > { %521 = vadd.xlane.f32.xlu1 %v520_v57 }
  0x69   : > { %517 = vadd.xlane.f32.xlu0 %v516_v59 }
  0x6c   : > { %529 = vadd.xlane.f32.xlu1 %v528_v9 }
  0x6d   : > { %525 = vadd.xlane.f32.xlu0 %v524_v39 }
  0x70   : > { %537 = vadd.xlane.f32.xlu1 %v536_v19 }
  0x71   : > { %533 = vadd.xlane.f32.xlu0 %v532_v44 }
  0x74   : > { %545 = vadd.xlane.f32.xlu1 %v544_v49 }
  0x75   : > { %541 = vadd.xlane.f32.xlu0 %v540_v34 }
  0xa5   : > { %v328_v32 = vpop.xlane.xlu1 %327 }
  0xa6   : > { %v320_v47 = vpop.xlane.xlu0 %319  ;;  %v1914_v63 = vmul.f32 0.0051020407, %v328_v32 }
  0xa7   : > { %v1918_v54 = vmul.f32 0.0051020407, %v320_v47 }
  0xa8   : > { %v595_v58 = vmul.f32 %v1914_v63, %v1914_v63 }
  0xa9   : > { %v332_v29 = vpop.xlane.xlu1 %331  ;;  %v593_v27 = vmul.f32 %v1918_v54, %v1918_v54 }
  0xaa   : > { %v324_v38 = vpop.xlane.xlu0 %323  ;;  %v1920_v57 = vmul.f32 0.0051020407, %v332_v29 }
  0xab   : > { %v1922_v12 = vmul.f32 0.0051020407, %v324_v38 }
  0xac   : > { %v1942_v13 = vmul.f32 %v1920_v57, %v1920_v57 }
  0xad   : > { %v340_v61 = vpop.xlane.xlu1 %339  ;;  %v594_v30 = vmul.f32 %v1922_v12, %v1922_v12 }
  0xae   : > { %v336_v35 = vpop.xlane.xlu0 %335  ;;  %v1924_v59 = vmul.f32 0.0051020407, %v340_v61 }
  0xaf   : > { %v1931_v7 = vmul.f32 0.0051020407, %v336_v35 }
  0xb0   : > { %v1954_v45 = vmul.f32 %v1924_v59, %v1924_v59 }
  0xb1   : > { %v348_v52 = vpop.xlane.xlu1 %347  ;;  %v597_v49 = vmul.f32 %v1931_v7, %v1931_v7 }
  0xb2   : > { %v344_v37 = vpop.xlane.xlu0 %343  ;;  %v1933_v62 = vmul.f32 0.0051020407, %v348_v52 }
  0xb3   : > { %v1944_v8 = vmul.f32 0.0051020407, %v344_v37 }
  0xb4   : > { %v1966_v32 = vmul.f32 %v1933_v62, %v1933_v62 }
  0xb5   : > { %v356_v41 = vpop.xlane.xlu1 %355  ;;  %v1973_v61 = vmul.f32 %v1944_v8, %v1944_v8 }
  0xb6   : > { %v352_v42 = vpop.xlane.xlu0 %351  ;;  %v1950_v19 = vmul.f32 0.0051020407, %v356_v41 }
  0xb7   : > { %v1957_v21 = vmul.f32 0.0051020407, %v352_v42 }
  0xb8   : > { %2537 = vst [vmem:[#allocation3_spill] sm:$0xff] %v1950_v19  ;;  %v1982_v41 = vmul.f32 %v1950_v19, %v1950_v19 }
  0xb9   : > { %v364_v55 = vpop.xlane.xlu1 %363 }
  0xba   : > { %v360_v40 = vpop.xlane.xlu0 %359  ;;  %v1959_v24 = vmul.f32 0.0051020407, %v364_v55 }
  0xbb   : > { %v1975_v35 = vmul.f32 0.0051020407, %v360_v40 }
  0xbc   : > { %2538 = vst [vmem:[#allocation4_spill] sm:$0xff] %v1959_v24  ;;  %v1992_v40 = vmul.f32 %v1959_v24, %v1959_v24 }
  0xbd   : > { %v372_v43 = vpop.xlane.xlu1 %371  ;;  %2539 = vst [vmem:[#allocation5_spill] sm:$0xff] %v1975_v35 }
  0xbe   : > { %v368_v46 = vpop.xlane.xlu0 %367  ;;  %v1977_v52 = vmul.f32 0.0051020407, %v372_v43 }
  0xbf   : > { %v1994_v43 = vmul.f32 0.0051020407, %v368_v46 }
  0xc0   : > { %2540 = vst [vmem:[#allocation6_spill] sm:$0xff] %v1977_v52  ;;  %v2006_v16 = vmul.f32 %v1977_v52, %v1977_v52 }
  0xc1   : > { %v380_v48 = vpop.xlane.xlu1 %379  ;;  %2541 = vst [vmem:[#allocation7_spill] sm:$0xff] %v1994_v43 }
  0xc2   : > { %v376_v60 = vpop.xlane.xlu0 %375  ;;  %v1997_v33 = vmul.f32 0.0051020407, %v380_v48 }
  0xc3   : > { %v2009_v39 = vmul.f32 0.0051020407, %v376_v60 }
  0xc4   : > { %2542 = vst [vmem:[#allocation8_spill] sm:$0xff] %v1997_v33 }
  0xc5   : > { %v388_v51 = vpop.xlane.xlu1 %387 }
  0xc6   : > { %v1910_v53 = vpop.xlane.xlu0 %383  ;;  %v2016_v24 = vmul.f32 0.0051020407, %v388_v51  ;;  %v2028_v51 = vmul.f32 %v2009_v39, %v2009_v39 }
  0xc8   : > { %2543 = vst [vmem:[#allocation9_spill] sm:$0xff] %v2016_v24 }
  0xc9   : > { %v1912_v50 = vpop.xlane.xlu1 %395 }
  0xca   : > { %v1916_v56 = vpop.xlane.xlu0 %391 }
  0xcd   : > { %v1926_v3 = vpop.xlane.xlu1 %403 }
  0xce   : > { %v1935_v9 = vpop.xlane.xlu0 %399 }
  0xd1   : > { %v458_v25 = vpop.xlane.xlu1 %457 }
  0xd2   : > { %v570_v47 = vmul.f32 0.0051020407, %v458_v25  ;;  %v1968_v29 = vpop.xlane.xlu0 %407  ;;  %v1987_v25 = vmul.f32 %v1957_v21, %v1957_v21 }
  0xd4   : > { %v616_v55 = vsub.f32 %v570_v47, %v593_v27  ;;  %v2001_v47 = vmul.f32 %v1975_v35, %v1975_v35  ;;  %v2020_v35 = vmul.f32 %v1997_v33, %v1997_v33 }
  0xd5   : > { %v466_v44 = vpop.xlane.xlu1 %465 }
  0xd6   : > { %v639_v34 = vmax.f32 %v616_v55, 0.0  ;;  %v572_v42 = vmul.f32 0.0051020407, %v466_v44  ;;  %v462_v27 = vpop.xlane.xlu0 %461  ;;  %v2013_v44 = vmul.f32 %v1994_v43, %v1994_v43 }
  0xd7   : > { %v571_v46 = vmul.f32 0.0051020407, %v462_v27 }
  0xd8   : > { %v662_v48 = vadd.f32 1e-05, %v639_v34  ;;  %v618_v37 = vsub.f32 %v572_v42, %v595_v58  ;;  %v2024_v34 = vmul.f32 0.0051020407, %v1910_v53 }
  0xd9   : > { %v617_v38 = vsub.f32 %v571_v46, %v594_v30  ;;  %v474_v19 = vpop.xlane.xlu1 %473 }
  0xda   : > { %1363 = vrsqrt.f32 %v662_v48  ;;  %v641_v27 = vmax.f32 %v618_v37, 0.0  ;;  %v574_v60 = vmul.f32 0.0051020407, %v474_v19  ;;  %v470_v17 = vpop.xlane.xlu0 %469  ;;  %v2033_v37 = vmul.f32 %v2016_v24, %v2016_v24  ;;  %v271_v24 = vld [vmem:[%s2080_s26 + $0x8] sm:$0xff] }
  0xdb   : > { %v640_v42 = vmax.f32 %v617_v38, 0.0  ;;  %v573_v52 = vmul.f32 0.0051020407, %v470_v17  ;;  %v2036_v19 = vmul.f32 0.0051020407, %v1912_v50 }
  0xdc   : > { %v664_v46 = vadd.f32 1e-05, %v641_v27  ;;  %v620_v55 = vsub.f32 %v574_v60, %v597_v49  ;;  %v2042_v49 = vmul.f32 %v2024_v34, %v2024_v34 }
  0xdd   : > { %2544 = vst [vmem:[#allocation10_spill] sm:$0xff] %v2036_v19  ;;  %v663_v48 = vadd.f32 1e-05, %v640_v42  ;;  %v619_v53 = vsub.f32 %v573_v52, %v1942_v13  ;;  %v482_v38 = vpop.xlane.xlu1 %481  ;;  %v2046_v42 = vmul.f32 0.0051020407, %v1916_v56 }
  0xde   : > { %1365 = vrsqrt.f32 %v664_v46  ;;  %v643_v58 = vmax.f32 %v620_v55, 0.0  ;;  %v576_v33 = vmul.f32 0.0051020407, %v482_v38  ;;  %v478_v43 = vpop.xlane.xlu0 %477  ;;  %v2051_v55 = vmul.f32 %v2036_v19, %v2036_v19  ;;  %v270_v19 = vld [vmem:[%s2080_s26] sm:$0xff] }
  0xdf   : > { %1367 = vrsqrt.f32 %v663_v48  ;;  %v642_v27 = vmax.f32 %v619_v53, 0.0  ;;  %v575_v60 = vmul.f32 0.0051020407, %v478_v43  ;;  %v2054_v46 = vmul.f32 0.0051020407, %v1926_v3 }
  0xe0   : > { %v666_v13 = vadd.f32 1e-05, %v643_v58  ;;  %v622_v52 = vsub.f32 %v576_v33, %v1973_v61  ;;  %v2058_v43 = vmul.f32 0.0051020407, %v1935_v9  ;;  %v2063_v3 = vmul.f32 %v2046_v42, %v2046_v42 }
  0xe1   : > { %2545 = vst [vmem:[#allocation11_spill] sm:$0xff] %v2054_v46  ;;  %v665_v38 = vadd.f32 1e-05, %v642_v27  ;;  %v621_v48 = vsub.f32 %v575_v60, %v1954_v45  ;;  %v490_v53 = vpop.xlane.xlu1 %489  ;;  %v2069_v60 = vmul.f32 %v2054_v46, %v2054_v46 }
  0xe2   : > { %2546 = vst [vmem:[#allocation12_spill] sm:$0xff] %v2058_v43  ;;  %1369 = vrsqrt.f32 %v666_v13  ;;  %v645_v56 = vmax.f32 %v622_v52, 0.0  ;;  %v578_v58 = vmul.f32 0.0051020407, %v490_v53  ;;  %v486_v17 = vpop.xlane.xlu0 %485  ;;  %v2072_v13 = vmul.f32 0.0051020407, %v1968_v29 }
  0xe3   : > { %1371 = vrsqrt.f32 %v665_v38  ;;  %v644_v61 = vmax.f32 %v621_v48, 0.0  ;;  %v577_v50 = vmul.f32 0.0051020407, %v486_v17 }
  0xe4   : > { %v668_v27 = vadd.f32 1e-05, %v645_v56  ;;  %v624_v9 = vsub.f32 %v578_v58, %v1987_v25  ;;  %v2084_v25 = vmul.f32 %v2058_v43, %v2058_v43 }
  0xe5   : > { %v667_v52 = vadd.f32 1e-05, %v644_v61  ;;  %v623_v38 = vsub.f32 %v577_v50, %v1966_v32  ;;  %v498_v17 = vpop.xlane.xlu1 %497  ;;  %v2547_v61 = vsub.f32 0.0, %v1918_v54 }
  0xe6   : > { %1373 = vrsqrt.f32 %v668_v27  ;;  %v647_v29 = vmax.f32 %v624_v9, 0.0  ;;  %v580_v48 = vmul.f32 0.0051020407, %v498_v17  ;;  %v494_v53 = vpop.xlane.xlu0 %493  ;;  %v2098_v27 = vmul.f32 %v2072_v13, %v2072_v13 }
  0xe7   : > { %v1364_v56 = vpop.eup %1363  ;;  %1375 = vrsqrt.f32 %v667_v52  ;;  %v646_v50 = vmax.f32 %v623_v38, 0.0  ;;  %v579_v58 = vmul.f32 0.0051020407, %v494_v53 }
  0xe8   : > { %v731_v33 = vmul.f32 %v1364_v56, %v2547_v61  ;;  %v754_v45 = vmul.f32 %v1364_v56, %v1595_v2  ;;  %v755_v30 = vmul.f32 %v1364_v56, %v1600_v4  ;;  %v670_v46 = vadd.f32 1e-05, %v647_v29 }
  0xe9   : > { %v669_v9 = vadd.f32 1e-05, %v646_v50  ;;  %v626_v52 = vsub.f32 %v580_v48, %v2001_v47  ;;  %v625_v38 = vsub.f32 %v579_v58, %v1982_v41  ;;  %v506_v54 = vpop.xlane.xlu1 %505  ;;  %v2548_v48 = vsub.f32 0.0, %v1914_v63 }
  0xea   : > { %v800_v17 = vadd.f32 %v754_v45, %v731_v33  ;;  %v801_v2 = vadd.f32 %v755_v30, %v731_v33  ;;  %1377 = vrsqrt.f32 %v670_v46  ;;  %v2102_v4 = vmul.f32 0.0051020407, %v506_v54  ;;  %v502_v29 = vpop.xlane.xlu0 %501  ;;  %v274_v46 = vld [vmem:[%s2080_s26 + $0x20] sm:$0xff]  ;;  %v275_v33 = vld [vmem:[%s2080_s26 + $0x28] sm:$0xff] }
  0xeb   : > { %v1366_v53 = vpop.eup %1365  ;;  %1379 = vrsqrt.f32 %v669_v9  ;;  %v649_v56 = vmax.f32 %v626_v52, 0.0  ;;  %v648_v61 = vmax.f32 %v625_v38, 0.0  ;;  %v2104_v32 = vmul.f32 0.0051020407, %v502_v29 }
  0xec   : > { %v1368_v50 = vpop.eup %1367  ;;  %v846_v47 = vadd.f32 %v800_v17, %v270_v19  ;;  %v847_v41 = vadd.f32 %v801_v2, %v271_v24  ;;  %v733_v45 = vmul.f32 %v1366_v53, %v2548_v48  ;;  %v758_v30 = vmul.f32 %v1366_v53, %v1589_v0  ;;  %v272_v17 = vld [vmem:[%s2080_s26 + $0x10] sm:$0xff]  ;;  %v273_v2 = vld [vmem:[%s2080_s26 + $0x18] sm:$0xff] }
  0xed   : > { %v759_v58 = vmul.f32 %v1366_v53, %v1592_v1  ;;  %v2549_v9 = vsub.f32 0.0, %v1922_v12  ;;  %v756_v38 = vmul.f32 %v1368_v50, %v1614_v10  ;;  %v757_v54 = vmul.f32 %v1368_v50, %v1617_v11  ;;  %v2116_v29 = vpop.xlane.xlu1 %513 }
  0xee   : > { %v892_v24 = vmax.f32 %v846_v47, 0.0  ;;  %v893_v19 = vmax.f32 %v847_v41, 0.0  ;;  %v804_v63 = vadd.f32 %v758_v30, %v733_v45  ;;  %v2120_v0 = vadd.f32 1e-05, %v649_v56  ;;  %v2124_v10 = vpop.xlane.xlu0 %509 }
  0xef   : > { %v732_v52 = vmul.f32 %v1368_v50, %v2549_v9  ;;  %v1370_v48 = vpop.eup %1369  ;;  %v805_v43 = vadd.f32 %v759_v58, %v733_v45  ;;  %v2122_v53 = vadd.f32 1e-05, %v648_v61  ;;  %v2550_v50 = vsub.f32 0.0, %v1931_v7  ;;  %v278_v9 = vld [vmem:[%s2080_s26 + $0x40] sm:$0xff] }
  0xf0   : > { %v1372_v11 = vpop.eup %1371  ;;  %938 = vst [vmem:[%s2127_s29] sm:$0xff] %v892_v24  ;;  %939 = vst.msk [vmem:[%s2127_s29 + $0x8] sm:$0xff] %vm316_vm0, %v893_v19  ;;  %v850_v56 = vadd.f32 %v804_v63, %v274_v46  ;;  %v762_v41 = vmul.f32 %v1370_v48, %v1636_v20  ;;  %v763_v61 = vmul.f32 %v1370_v48, %v1626_v15  ;;  %v276_v63 = vld [vmem:[%s2080_s26 + $0x30] sm:$0xff]  ;;  %1381 = vrsqrt.f32 %v2120_v0 }
  0xf1   : > { %v802_v1 = vadd.f32 %v756_v38, %v732_v52  ;;  %v803_v12 = vadd.f32 %v757_v54, %v732_v52  ;;  %v735_v47 = vmul.f32 %v1370_v48, %v2550_v50  ;;  %v851_v45 = vadd.f32 %v805_v43, %v275_v33  ;;  %v279_v52 = vld [vmem:[%s2080_s26 + $0x48] sm:$0xff] }
  0xf2   : > { %v2551_v38 = vsub.f32 0.0, %v1920_v57  ;;  %v896_v24 = vmax.f32 %v850_v56, 0.0  ;;  %v760_v7 = vmul.f32 %v1372_v11, %v1603_v5  ;;  %v2552_v5 = vsub.f32 0.0, %v1944_v8 }
  0xf3   : > { %v848_v30 = vadd.f32 %v802_v1, %v272_v17  ;;  %v849_v58 = vadd.f32 %v803_v12, %v273_v2  ;;  %v808_v46 = vadd.f32 %v762_v41, %v735_v47  ;;  %v809_v19 = vadd.f32 %v763_v61, %v735_v47  ;;  %v1374_v20 = vpop.eup %1373  ;;  %v2143_v2 = vpop.xlane.xlu1 %521  ;;  %v277_v12 = vld [vmem:[%s2080_s26 + $0x38] sm:$0xff] }
  0xf4   : > { %v734_v54 = vmul.f32 %v1372_v11, %v2551_v38  ;;  %v897_v15 = vmax.f32 %v851_v45, 0.0  ;;  %v761_v17 = vmul.f32 %v1372_v11, %v1606_v6  ;;  %v1376_v57 = vpop.eup %1375  ;;  %942 = vst [vmem:[%s2127_s29 + $0x20] sm:$0xff] %v896_v24  ;;  %v737_v50 = vmul.f32 %v1374_v20, %v2552_v5  ;;  %v2158_v45 = vpop.xlane.xlu0 %517 }
  0xf5   : > { %v894_v43 = vmax.f32 %v848_v30, 0.0  ;;  %v895_v33 = vmax.f32 %v849_v58, 0.0  ;;  %v854_v48 = vadd.f32 %v808_v46, %v278_v9  ;;  %v855_v1 = vadd.f32 %v809_v19, %v279_v52  ;;  %v282_v9 = vld [vmem:[%s2080_s26 + $0x60] sm:$0xff]  ;;  %v283_v52 = vld [vmem:[%s2080_s26 + $0x68] sm:$0xff]  ;;  %v280_v46 = vld [vmem:[%s2080_s26 + $0x50] sm:$0xff] }
  0xf6   : > { %v806_v56 = vadd.f32 %v760_v7, %v734_v54  ;;  %943 = vst.msk [vmem:[%s2127_s29 + $0x28] sm:$0xff] %vm316_vm0, %v897_v15  ;;  %v807_v6 = vadd.f32 %v761_v17, %v734_v54  ;;  %v766_v11 = vmul.f32 %v1374_v20, %v1654_v28  ;;  %v767_v47 = vmul.f32 %v1374_v20, %v1644_v23  ;;  %v281_v20 = vld [vmem:[%s2080_s26 + $0x58] sm:$0xff] }
  0xf7   : > { %940 = vst [vmem:[%s2127_s29 + $0x10] sm:$0xff] %v894_v43  ;;  %941 = vst.msk [vmem:[%s2127_s29 + $0x18] sm:$0xff] %vm316_vm0, %v895_v33  ;;  %v2553_v41 = vsub.f32 0.0, %v1924_v59  ;;  %v900_v8 = vmax.f32 %v854_v48, 0.0  ;;  %v901_v30 = vmax.f32 %v855_v1, 0.0  ;;  %v764_v38 = vmul.f32 %v1376_v57, %v1631_v18  ;;  %v1378_v54 = vpop.eup %1377 }
  0xf8   : > { %v852_v58 = vadd.f32 %v806_v56, %v276_v63  ;;  %v853_v24 = vadd.f32 %v807_v6, %v277_v12  ;;  %v812_v28 = vadd.f32 %v766_v11, %v737_v50  ;;  %v813_v23 = vadd.f32 %v767_v47, %v737_v50  ;;  %v1380_v19 = vpop.eup %1379  ;;  %v286_v12 = vld [vmem:[%s2080_s26 + $0x80] sm:$0xff]  ;;  %v287_v47 = vld [vmem:[%s2080_s26 + $0x88] sm:$0xff] }
  0xf9   : > { %v736_v61 = vmul.f32 %v1376_v57, %v2553_v41  ;;  %v765_v59 = vmul.f32 %v1376_v57, %v1623_v14  ;;  %946 = vst [vmem:[%s2127_s29 + $0x40] sm:$0xff] %v900_v8  ;;  %947 = vst.msk [vmem:[%s2127_s29 + $0x48] sm:$0xff] %vm316_vm0, %v901_v30  ;;  %v2554_v43 = vsub.f32 0.0, %v1957_v21  ;;  %v770_v33 = vmul.f32 %v1378_v54, %v1672_v36  ;;  %v530_v14 = vpop.xlane.xlu1 %529 }
  0xfa   : > { %v898_v7 = vmax.f32 %v852_v58, 0.0  ;;  %v899_v63 = vmax.f32 %v853_v24, 0.0  ;;  %v858_v17 = vadd.f32 %v812_v28, %v282_v9  ;;  %v859_v48 = vadd.f32 %v813_v23, %v283_v52  ;;  %v284_v58 = vld [vmem:[%s2080_s26 + $0x70] sm:$0xff]  ;;  %v285_v52 = vld [vmem:[%s2080_s26 + $0x78] sm:$0xff] }
  0xfb   : > { %v810_v15 = vadd.f32 %v764_v38, %v736_v61  ;;  %v739_v18 = vmul.f32 %v1378_v54, %v2554_v43  ;;  %v811_v1 = vadd.f32 %v765_v59, %v736_v61  ;;  %v771_v56 = vmul.f32 %v1378_v54, %v1662_v31  ;;  %v526_v61 = vpop.xlane.xlu0 %525 }
  0xfc   : > { %944 = vst [vmem:[%s2127_s29 + $0x30] sm:$0xff] %v898_v7  ;;  %v2555_v21 = vsub.f32 0.0, %v1933_v62  ;;  %945 = vst.msk [vmem:[%s2127_s29 + $0x38] sm:$0xff] %vm316_vm0, %v899_v63  ;;  %v904_v36 = vmax.f32 %v858_v17, 0.0  ;;  %v905_v6 = vmax.f32 %v859_v48, 0.0  ;;  %v768_v41 = vmul.f32 %v1380_v19, %v1649_v26 }
  0xfd   : > { %v856_v57 = vadd.f32 %v810_v15, %v280_v46  ;;  %v816_v5 = vadd.f32 %v770_v33, %v739_v18  ;;  %v857_v11 = vadd.f32 %v811_v1, %v281_v20  ;;  %v817_v30 = vadd.f32 %v771_v56, %v739_v18  ;;  %v538_v0 = vpop.xlane.xlu1 %537 }
  0xfe   : > { %v738_v50 = vmul.f32 %v1380_v19, %v2555_v21  ;;  %v769_v9 = vmul.f32 %v1380_v19, %v1641_v22  ;;  %950 = vst [vmem:[%s2127_s29 + $0x60] sm:$0xff] %v904_v36  ;;  %951 = vst.msk [vmem:[%s2127_s29 + $0x68] sm:$0xff] %vm316_vm0, %v905_v6  ;;  %v628_v26 = vsub.f32 %v2102_v4, %v2013_v44  ;;  %1383 = vrsqrt.f32 %v2122_v53 }
  0xff   : > { %v902_v8 = vmax.f32 %v856_v57, 0.0  ;;  %v862_v31 = vadd.f32 %v816_v5, %v286_v12  ;;  %v903_v62 = vmax.f32 %v857_v11, 0.0  ;;  %v863_v54 = vadd.f32 %v817_v30, %v287_v47  ;;  %v534_v18 = vpop.xlane.xlu0 %533 }
 0x100   : > { %v814_v38 = vadd.f32 %v768_v41, %v738_v50  ;;  %v815_v28 = vadd.f32 %v769_v9, %v738_v50  ;;  %v651_v23 = vmax.f32 %v628_v26, 0.0  ;;  %v627_v46 = vsub.f32 %v2104_v32, %v1992_v40  ;;  %v1410_v26 = vld [vmem:[%s1586_s23 + $0xa8] sm:$0xff] }
 0x101   : > { %948 = vst [vmem:[%s2127_s29 + $0x50] sm:$0xff] %v902_v8  ;;  %v908_v24 = vmax.f32 %v862_v31, 0.0  ;;  %949 = vst.msk [vmem:[%s2127_s29 + $0x58] sm:$0xff] %vm316_vm0, %v903_v62  ;;  %v584_v59 = vmul.f32 0.0051020407, %v2116_v29  ;;  %v909_v19 = vmax.f32 %v863_v54, 0.0 }
 0x102   : > { %v860_v22 = vadd.f32 %v814_v38, %v284_v58  ;;  %v861_v44 = vadd.f32 %v815_v28, %v285_v52  ;;  %v583_v4 = vmul.f32 0.0051020407, %v2124_v10  ;;  %v586_v7 = vmul.f32 0.0051020407, %v2143_v2  ;;  %v2556_v58 = vld [vmem:[#allocation5_spill] sm:$0xff]  ;;  %v1409_v52 = vld [vmem:[%s1586_s23 + $0xa0] sm:$0xff] }
 0x103   : > { %954 = vst [vmem:[%s2127_s29 + $0x80] sm:$0xff] %v908_v24  ;;  %v674_v20 = vadd.f32 1e-05, %v651_v23  ;;  %v650_v15 = vmax.f32 %v627_v46, 0.0  ;;  %v630_v43 = vsub.f32 %v584_v59, %v2028_v51  ;;  %955 = vst.msk [vmem:[%s2127_s29 + $0x88] sm:$0xff] %vm316_vm0, %v909_v19  ;;  %v542_v6 = vpop.xlane.xlu0 %541  ;;  %v2557_v9 = vsub.f32 0.0, %v2556_v58 }
 0x104   : > { %v906_v53 = vmax.f32 %v860_v22, 0.0  ;;  %v907_v40 = vmax.f32 %v861_v44, 0.0  ;;  %v629_v32 = vsub.f32 %v583_v4, %v2006_v16  ;;  %v632_v29 = vsub.f32 %v586_v7, %v2042_v49  ;;  %v546_v49 = vpop.xlane.xlu1 %545  ;;  %v291_v24 = vld [vmem:[%s2080_s26 + $0xa8] sm:$0xff]  ;;  %v2558_v28 = vld [vmem:[#allocation3_spill] sm:$0xff]  ;;  %v1411_v46 = vld [vmem:[%s1586_s23 + $0x90] sm:$0xff] }
 0x105   : > { %v585_v33 = vmul.f32 0.0051020407, %v2158_v45  ;;  %1385 = vrsqrt.f32 %v674_v20  ;;  %v673_v10 = vadd.f32 1e-05, %v650_v15  ;;  %v653_v2 = vmax.f32 %v630_v43, 0.0  ;;  %v288_v4 = vld [vmem:[%s2080_s26 + $0x90] sm:$0xff] }
 0x106   : > { %952 = vst [vmem:[%s2127_s29 + $0x70] sm:$0xff] %v906_v53  ;;  %v588_v63 = vmul.f32 0.0051020407, %v530_v14  ;;  %953 = vst.msk [vmem:[%s2127_s29 + $0x78] sm:$0xff] %vm316_vm0, %v907_v40  ;;  %v652_v17 = vmax.f32 %v629_v32, 0.0  ;;  %v655_v48 = vmax.f32 %v632_v29, 0.0 }
 0x107   : > { %v631_v51 = vsub.f32 %v585_v33, %v2020_v35  ;;  %v587_v1 = vmul.f32 0.0051020407, %v526_v61  ;;  %1387 = vrsqrt.f32 %v673_v10  ;;  %v676_v12 = vadd.f32 1e-05, %v653_v2  ;;  %v289_v7 = vld [vmem:[%s2080_s26 + $0x98] sm:$0xff] }
 0x108   : > { %v634_v16 = vsub.f32 %v588_v63, %v2063_v3  ;;  %v590_v57 = vmul.f32 0.0051020407, %v538_v0  ;;  %v675_v56 = vadd.f32 1e-05, %v652_v17  ;;  %v678_v45 = vadd.f32 1e-05, %v655_v48 }
 0x109   : > { %v654_v5 = vmax.f32 %v631_v51, 0.0  ;;  %v633_v21 = vsub.f32 %v587_v1, %v2033_v37  ;;  %1389 = vrsqrt.f32 %v676_v12  ;;  %v589_v36 = vmul.f32 0.0051020407, %v534_v18  ;;  %v1382_v37 = vpop.eup %1381  ;;  %v2560_v12 = vld [vmem:[#allocation7_spill] sm:$0xff]  ;;  %v293_v58 = vld [vmem:[%s2080_s26 + $0xb8] sm:$0xff] }
 0x10a   : > { %v657_v14 = vmax.f32 %v634_v16, 0.0  ;;  %v636_v50 = vsub.f32 %v590_v57, %v2084_v25  ;;  %1391 = vrsqrt.f32 %v675_v56  ;;  %v592_v47 = vmul.f32 0.0051020407, %v546_v49  ;;  %v1413_v57 = vld [vmem:[%s1586_s23 + $0xc0] sm:$0xff] }
 0x10b   : > { %v677_v35 = vadd.f32 1e-05, %v654_v5  ;;  %v656_v11 = vmax.f32 %v633_v21, 0.0  ;;  %1393 = vrsqrt.f32 %v678_v45  ;;  %v635_v61 = vsub.f32 %v589_v36, %v2051_v55  ;;  %v1384_v31 = vpop.eup %1383  ;;  %v290_v55 = vld [vmem:[%s2080_s26 + $0xa0] sm:$0xff]  ;;  %v295_v36 = vld [vmem:[%s2080_s26 + $0xc8] sm:$0xff] }
 0x10c   : > { %v680_v3 = vadd.f32 1e-05, %v657_v14  ;;  %v659_v41 = vmax.f32 %v636_v50, 0.0  ;;  %v638_v8 = vsub.f32 %v592_v47, %v2098_v27  ;;  %v591_v30 = vmul.f32 0.0051020407, %v542_v6  ;;  %v1412_v27 = vld [vmem:[%s1586_s23 + $0x98] sm:$0xff] }
 0x10d   : > { %1395 = vrsqrt.f32 %v677_v35  ;;  %v679_v25 = vadd.f32 1e-05, %v656_v11  ;;  %v741_v62 = vmul.f32 %v1382_v37, %v2557_v9  ;;  %v774_v38 = vmul.f32 %v1409_v52, %v1382_v37  ;;  %v294_v21 = vld [vmem:[%s2080_s26 + $0xc0] sm:$0xff]  ;;  %v1414_v14 = vld [vmem:[%s1586_s23 + $0xc8] sm:$0xff] }
 0x10e   : > { %v775_v54 = vmul.f32 %v1410_v26, %v1382_v37  ;;  %1397 = vrsqrt.f32 %v680_v3  ;;  %v2559_v22 = vsub.f32 0.0, %v2558_v28  ;;  %v772_v59 = vmul.f32 %v1411_v46, %v1384_v31  ;;  %v2562_v35 = vld [vmem:[#allocation4_spill] sm:$0xff]  ;;  %v1415_v3 = vld [vmem:[%s1586_s23 + $0xb0] sm:$0xff] }
 0x10f   : > { %v773_v0 = vmul.f32 %v1412_v27, %v1384_v31  ;;  %1399 = vrsqrt.f32 %v679_v25  ;;  %v820_v19 = vadd.f32 %v774_v38, %v741_v62  ;;  %v682_v53 = vadd.f32 1e-05, %v659_v41  ;;  %v1418_v46 = vld [vmem:[%s1586_s23 + $0xe8] sm:$0xff]  ;;  %v2565_v27 = vld [vmem:[#allocation6_spill] sm:$0xff] }
 0x110   : > { %v740_v23 = vmul.f32 %v1384_v31, %v2559_v22  ;;  %v821_v44 = vadd.f32 %v775_v54, %v741_v62  ;;  %v658_v20 = vmax.f32 %v635_v61, 0.0  ;;  %v661_v18 = vmax.f32 %v638_v8, 0.0  ;;  %v1416_v61 = vld [vmem:[%s1586_s23 + $0xb8] sm:$0xff]  ;;  %v292_v31 = vld [vmem:[%s2080_s26 + $0xb0] sm:$0xff]  ;;  %v1417_v22 = vld [vmem:[%s1586_s23 + $0xe0] sm:$0xff] }
 0x111   : > { %v637_v40 = vsub.f32 %v591_v30, %v2069_v60  ;;  %v866_v32 = vadd.f32 %v820_v19, %v290_v55  ;;  %1401 = vrsqrt.f32 %v682_v53  ;;  %v2561_v16 = vsub.f32 0.0, %v2560_v12 }
 0x112   : > { %v818_v15 = vadd.f32 %v772_v59, %v740_v23  ;;  %v819_v43 = vadd.f32 %v773_v0, %v740_v23  ;;  %v867_v29 = vadd.f32 %v821_v44, %v291_v24  ;;  %v681_v33 = vadd.f32 1e-05, %v658_v20  ;;  %v1386_v10 = vpop.eup %1385  ;;  %v298_v20 = vld [vmem:[%s2080_s26 + $0xe0] sm:$0xff] }
 0x113   : > { %v684_v17 = vadd.f32 1e-05, %v661_v18  ;;  %v660_v48 = vmax.f32 %v637_v40, 0.0  ;;  %v912_v51 = vmax.f32 %v866_v32, 0.0  ;;  %v743_v60 = vmul.f32 %v1386_v10, %v2561_v16 }
 0x114   : > { %v864_v2 = vadd.f32 %v818_v15, %v288_v4  ;;  %v865_v63 = vadd.f32 %v819_v43, %v289_v7  ;;  %v913_v1 = vmax.f32 %v867_v29, 0.0  ;;  %v778_v49 = vmul.f32 %v1413_v57, %v1386_v10  ;;  %v1388_v56 = vpop.eup %1387  ;;  %v1419_v15 = vld [vmem:[%s1586_s23 + $0xd0] sm:$0xff] }
 0x115   : > { %v779_v50 = vmul.f32 %v1414_v14, %v1386_v10  ;;  %1403 = vrsqrt.f32 %v681_v33  ;;  %958 = vst [vmem:[%s2127_s29 + $0xa0] sm:$0xff] %v912_v51  ;;  %v2563_v11 = vsub.f32 0.0, %v2562_v35  ;;  %v776_v41 = vmul.f32 %v1415_v3, %v1388_v56  ;;  %v296_v33 = vld [vmem:[%s2080_s26 + $0xd0] sm:$0xff]  ;;  %v1420_v10 = vld [vmem:[%s1586_s23 + $0xd8] sm:$0xff]  ;;  %v1422_v14 = vld [vmem:[%s1586_s23 + $0x108] sm:$0xff] }
 0x116   : > { %v910_v45 = vmax.f32 %v864_v2, 0.0  ;;  %v911_v5 = vmax.f32 %v865_v63, 0.0  ;;  %959 = vst.msk [vmem:[%s2127_s29 + $0xa8] sm:$0xff] %vm316_vm0, %v913_v1  ;;  %v824_v6 = vadd.f32 %v778_v49, %v743_v60  ;;  %v777_v37 = vmul.f32 %v1416_v61, %v1388_v56  ;;  %v1390_v25 = vpop.eup %1389  ;;  %v297_v51 = vld [vmem:[%s2080_s26 + $0xd8] sm:$0xff]  ;;  %v1423_v35 = vld [vmem:[%s1586_s23 + $0xf0] sm:$0xff] }
 0x117   : > { %v742_v47 = vmul.f32 %v1388_v56, %v2563_v11  ;;  %v730_v8 = vsub.f32 0.0, %v2072_v13  ;;  %v825_v30 = vadd.f32 %v779_v50, %v743_v60  ;;  %1405 = vrsqrt.f32 %v684_v17  ;;  %v1392_v62 = vpop.eup %1391  ;;  %v1421_v56 = vld [vmem:[%s1586_s23 + $0x100] sm:$0xff] }
 0x118   : > { %956 = vst [vmem:[%s2127_s29 + $0x90] sm:$0xff] %v910_v45  ;;  %957 = vst.msk [vmem:[%s2127_s29 + $0x98] sm:$0xff] %vm316_vm0, %v911_v5  ;;  %v2247_v9 = vadd.f32 1e-05, %v660_v48  ;;  %v870_v52 = vadd.f32 %v824_v6, %v294_v21  ;;  %v2564_v54 = vsub.f32 0.0, %v2009_v39  ;;  %v1394_v24 = vpop.eup %1393  ;;  %v782_v23 = vmul.f32 %v1417_v22, %v1390_v25  ;;  %v299_v39 = vld [vmem:[%s2080_s26 + $0xe8] sm:$0xff] }
 0x119   : > { %v822_v38 = vadd.f32 %v776_v41, %v742_v47  ;;  %v823_v26 = vadd.f32 %v777_v37, %v742_v47  ;;  %v871_v28 = vadd.f32 %v825_v30, %v295_v36  ;;  %v783_v59 = vmul.f32 %v1418_v46, %v1390_v25  ;;  %v302_v21 = vld [vmem:[%s2080_s26 + $0x100] sm:$0xff]  ;;  %v2568_v36 = vld [vmem:[#allocation8_spill] sm:$0xff]  ;;  %v300_v30 = vld [vmem:[%s2080_s26 + $0xf0] sm:$0xff] }
 0x11a   : > { %v745_v55 = vmul.f32 %v1390_v25, %v2564_v54  ;;  %v2566_v0 = vsub.f32 0.0, %v2565_v27  ;;  %v1396_v44 = vpop.eup %1395  ;;  %v916_v4 = vmax.f32 %v870_v52, 0.0  ;;  %v780_v43 = vmul.f32 %v1419_v15, %v1392_v62  ;;  %v303_v37 = vld [vmem:[%s2080_s26 + $0x108] sm:$0xff]  ;;  %v1425_v22 = vld [vmem:[%s1586_s23 + $0x120] sm:$0xff] }
 0x11b   : > { %v868_v7 = vadd.f32 %v822_v38, %v292_v31  ;;  %v869_v53 = vadd.f32 %v823_v26, %v293_v58  ;;  %v1398_v18 = vpop.eup %1397  ;;  %v917_v40 = vmax.f32 %v871_v28, 0.0  ;;  %v781_v2 = vmul.f32 %v1420_v10, %v1392_v62 }
 0x11c   : > { %v744_v19 = vmul.f32 %v1392_v62, %v2566_v0  ;;  %v828_v32 = vadd.f32 %v782_v23, %v745_v55  ;;  %v829_v29 = vadd.f32 %v783_v59, %v745_v55  ;;  %v2260_v63 = vpop.eup %1399  ;;  %962 = vst [vmem:[%s2127_s29 + $0xc0] sm:$0xff] %v916_v4  ;;  %v2567_v12 = vsub.f32 0.0, %v2024_v34  ;;  %v1424_v62 = vld [vmem:[%s1586_s23 + $0xf8] sm:$0xff] }
 0x11d   : > { %v914_v17 = vmax.f32 %v868_v7, 0.0  ;;  %v915_v48 = vmax.f32 %v869_v53, 0.0  ;;  %963 = vst.msk [vmem:[%s2127_s29 + $0xc8] sm:$0xff] %vm316_vm0, %v917_v40  ;;  %v786_v45 = vmul.f32 %v1421_v56, %v1394_v24  ;;  %v787_v50 = vmul.f32 %v1422_v14, %v1394_v24  ;;  %v301_v55 = vld [vmem:[%s2080_s26 + $0xf8] sm:$0xff]  ;;  %v307_v53 = vld [vmem:[%s2080_s26 + $0x128] sm:$0xff] }
 0x11e   : > { %v826_v1 = vadd.f32 %v780_v43, %v744_v19  ;;  %v747_v16 = vmul.f32 %v1394_v24, %v2567_v12  ;;  %v874_v60 = vadd.f32 %v828_v32, %v298_v20  ;;  %v875_v57 = vadd.f32 %v829_v29, %v299_v39  ;;  %v1402_v47 = vpop.eup %1401  ;;  %v2571_v20 = vld [vmem:[#allocation9_spill] sm:$0xff]  ;;  %v2573_v12 = vld [vmem:[#allocation12_spill] sm:$0xff]  ;;  %v305_v56 = vld [vmem:[%s2080_s26 + $0x118] sm:$0xff] }
 0x11f   : > { %v827_v49 = vadd.f32 %v781_v2, %v744_v19  ;;  %960 = vst [vmem:[%s2127_s29 + $0xb0] sm:$0xff] %v914_v17  ;;  %961 = vst.msk [vmem:[%s2127_s29 + $0xb8] sm:$0xff] %vm316_vm0, %v915_v48  ;;  %v2569_v34 = vsub.f32 0.0, %v2568_v36  ;;  %v784_v11 = vmul.f32 %v1423_v35, %v1396_v44  ;;  %v785_v52 = vmul.f32 %v1424_v62, %v1396_v44  ;;  %v306_v19 = vld [vmem:[%s2080_s26 + $0x120] sm:$0xff]  ;;  %v1427_v43 = vld [vmem:[%s1586_s23 + $0x110] sm:$0xff] }
 0x120   : > { %v872_v5 = vadd.f32 %v826_v1, %v296_v33  ;;  %v920_v3 = vmax.f32 %v874_v60, 0.0  ;;  %v921_v41 = vmax.f32 %v875_v57, 0.0  ;;  %v832_v25 = vadd.f32 %v786_v45, %v747_v16  ;;  %v304_v2 = vld [vmem:[%s2080_s26 + $0x110] sm:$0xff]  ;;  %v1428_v48 = vld [vmem:[%s1586_s23 + $0x118] sm:$0xff]  ;;  %v1429_v45 = vld [vmem:[%s1586_s23 + $0x140] sm:$0xff] }
 0x121   : > { %v746_v6 = vmul.f32 %v1396_v44, %v2569_v34  ;;  %v873_v61 = vadd.f32 %v827_v49, %v297_v51  ;;  %v833_v58 = vadd.f32 %v787_v50, %v747_v16  ;;  %v2570_v24 = vsub.f32 0.0, %v2046_v42  ;;  %v1426_v44 = vld [vmem:[%s1586_s23 + $0x128] sm:$0xff]  ;;  %v310_v34 = vld [vmem:[%s2080_s26 + $0x140] sm:$0xff]  ;;  %v2575_v35 = vld [vmem:[#allocation10_spill] sm:$0xff] }
 0x122   : > { %v918_v31 = vmax.f32 %v872_v5, 0.0  ;;  %966 = vst [vmem:[%s2127_s29 + $0xe0] sm:$0xff] %v920_v3  ;;  %967 = vst.msk [vmem:[%s2127_s29 + $0xe8] sm:$0xff] %vm316_vm0, %v921_v41  ;;  %v878_v54 = vadd.f32 %v832_v25, %v302_v21  ;;  %v790_v23 = vmul.f32 %v1425_v22, %v1398_v18  ;;  %v1404_v46 = vpop.eup %1403  ;;  %v791_v4 = vmul.f32 %v1426_v44, %v1398_v18  ;;  %v1430_v21 = vld [vmem:[%s1586_s23 + $0x148] sm:$0xff]  ;;  %v1431_v25 = vld [vmem:[%s1586_s23 + $0x130] sm:$0xff] }
 0x123   : > { %v830_v38 = vadd.f32 %v784_v11, %v746_v6  ;;  %v919_v26 = vmax.f32 %v873_v61, 0.0  ;;  %v749_v28 = vmul.f32 %v1398_v18, %v2570_v24  ;;  %v879_v59 = vadd.f32 %v833_v58, %v303_v37  ;;  %v308_v58 = vld [vmem:[%s2080_s26 + $0x130] sm:$0xff]  ;;  %v1432_v62 = vld [vmem:[%s1586_s23 + $0x138] sm:$0xff]  ;;  %v315_v44 = vld [vmem:[%s2080_s26 + $0x168] sm:$0xff] }
 0x124   : > { %964 = vst [vmem:[%s2127_s29 + $0xd0] sm:$0xff] %v918_v31  ;;  %v831_v27 = vadd.f32 %v785_v52, %v746_v6  ;;  %v924_v7 = vmax.f32 %v878_v54, 0.0  ;;  %v2572_v39 = vsub.f32 0.0, %v2571_v20  ;;  %v788_v40 = vmul.f32 %v1427_v43, %v2260_v63  ;;  %v1406_v32 = vpop.eup %1405  ;;  %v311_v6 = vld [vmem:[%s2080_s26 + $0x148] sm:$0xff] }
 0x125   : > { %v876_v0 = vadd.f32 %v830_v38, %v300_v30  ;;  %965 = vst.msk [vmem:[%s2127_s29 + $0xd8] sm:$0xff] %vm316_vm0, %v919_v26  ;;  %v836_v42 = vadd.f32 %v790_v23, %v749_v28  ;;  %v925_v29 = vmax.f32 %v879_v59, 0.0  ;;  %v837_v10 = vadd.f32 %v791_v4, %v749_v28  ;;  %v1433_v28 = vld [vmem:[%s1586_s23 + $0x160] sm:$0xff] }
 0x126   : > { %v748_v15 = vmul.f32 %v2260_v63, %v2572_v39  ;;  %v877_v18 = vadd.f32 %v831_v27, %v301_v55  ;;  %970 = vst [vmem:[%s2127_s29 + $0x100] sm:$0xff] %v924_v7  ;;  %v789_v51 = vmul.f32 %v1428_v48, %v2260_v63  ;;  %v2574_v16 = vsub.f32 0.0, %v2573_v12  ;;  %v309_v55 = vld [vmem:[%s2080_s26 + $0x138] sm:$0xff]  ;;  %v314_v27 = vld [vmem:[%s2080_s26 + $0x160] sm:$0xff]  ;;  %v312_v48 = vld [vmem:[%s2080_s26 + $0x150] sm:$0xff] }
 0x127   : > { %v922_v33 = vmax.f32 %v876_v0, 0.0  ;;  %v882_v17 = vadd.f32 %v836_v42, %v306_v19  ;;  %971 = vst.msk [vmem:[%s2127_s29 + $0x108] sm:$0xff] %vm316_vm0, %v925_v29  ;;  %v883_v49 = vadd.f32 %v837_v10, %v307_v53  ;;  %v794_v5 = vmul.f32 %v1429_v45, %v1402_v47 }
 0x128   : > { %v834_v1 = vadd.f32 %v788_v40, %v748_v15  ;;  %v751_v60 = vmul.f32 %v1402_v47, %v2574_v16  ;;  %v923_v57 = vmax.f32 %v877_v18, 0.0  ;;  %v795_v14 = vmul.f32 %v1430_v21, %v1402_v47  ;;  %v2577_v40 = vld [vmem:[#allocation11_spill] sm:$0xff] }
 0x129   : > { %968 = vst [vmem:[%s2127_s29 + $0xf0] sm:$0xff] %v922_v33  ;;  %v928_v63 = vmax.f32 %v882_v17, 0.0  ;;  %v835_v50 = vadd.f32 %v789_v51, %v748_v15  ;;  %v2576_v11 = vsub.f32 0.0, %v2575_v35  ;;  %v929_v41 = vmax.f32 %v883_v49, 0.0  ;;  %v1435_v33 = vld [vmem:[%s1586_s23 + $0x150] sm:$0xff]  ;;  %v313_v51 = vld [vmem:[%s2080_s26 + $0x158] sm:$0xff] }
 0x12a   : > { %v880_v36 = vadd.f32 %v834_v1, %v304_v2  ;;  %969 = vst.msk [vmem:[%s2127_s29 + $0xf8] sm:$0xff] %vm316_vm0, %v923_v57  ;;  %v840_v61 = vadd.f32 %v794_v5, %v751_v60  ;;  %v841_v37 = vadd.f32 %v795_v14, %v751_v60  ;;  %v792_v47 = vmul.f32 %v1431_v25, %v1404_v46  ;;  %v1436_v2 = vld [vmem:[%s1586_s23 + $0x158] sm:$0xff] }
 0x12b   : > { %v750_v3 = vmul.f32 %v1404_v46, %v2576_v11  ;;  %974 = vst [vmem:[%s2127_s29 + $0x120] sm:$0xff] %v928_v63  ;;  %v881_v30 = vadd.f32 %v835_v50, %v305_v56  ;;  %v793_v52 = vmul.f32 %v1432_v62, %v1404_v46  ;;  %v753_v38 = vmul.f32 %v1406_v32, %v730_v8  ;;  %v1434_v46 = vld [vmem:[%s1586_s23 + $0x168] sm:$0xff] }
 0x12c   : > { %v926_v31 = vmax.f32 %v880_v36, 0.0  ;;  %975 = vst.msk [vmem:[%s2127_s29 + $0x128] sm:$0xff] %vm316_vm0, %v929_v41  ;;  %v886_v26 = vadd.f32 %v840_v61, %v310_v34  ;;  %v887_v54 = vadd.f32 %v841_v37, %v311_v6  ;;  %v798_v22 = vmul.f32 %v1433_v28, %v1406_v32 }
 0x12d   : > { %v838_v24 = vadd.f32 %v792_v47, %v750_v3  ;;  %v927_v23 = vmax.f32 %v881_v30, 0.0  ;;  %v839_v59 = vadd.f32 %v793_v52, %v750_v3  ;;  %v799_v0 = vmul.f32 %v1434_v46, %v1406_v32 }
 0x12e   : > { %972 = vst [vmem:[%s2127_s29 + $0x110] sm:$0xff] %v926_v31  ;;  %1407 = vrsqrt.f32 %v2247_v9  ;;  %v932_v13 = vmax.f32 %v886_v26, 0.0  ;;  %v933_v8 = vmax.f32 %v887_v54, 0.0  ;;  %v844_v4 = vadd.f32 %v798_v22, %v753_v38 }
 0x12f   : > { %v884_v19 = vadd.f32 %v838_v24, %v308_v58  ;;  %973 = vst.msk [vmem:[%s2127_s29 + $0x118] sm:$0xff] %vm316_vm0, %v927_v23  ;;  %v885_v7 = vadd.f32 %v839_v59, %v309_v55  ;;  %v845_v53 = vadd.f32 %v799_v0, %v753_v38  ;;  %v729_v32 = vsub.f32 0.0, %v2577_v40 }
 0x130   : > { %978 = vst [vmem:[%s2127_s29 + $0x140] sm:$0xff] %v932_v13  ;;  %979 = vst.msk [vmem:[%s2127_s29 + $0x148] sm:$0xff] %vm316_vm0, %v933_v8  ;;  %v890_v20 = vadd.f32 %v844_v4, %v314_v27 }
 0x131   : > { %v930_v42 = vmax.f32 %v884_v19, 0.0  ;;  %v931_v9 = vmax.f32 %v885_v7, 0.0  ;;  %v891_v39 = vadd.f32 %v845_v53, %v315_v44 }
 0x132   : > { %v936_v15 = vmax.f32 %v890_v20, 0.0 }
 0x133   : > { %976 = vst [vmem:[%s2127_s29 + $0x130] sm:$0xff] %v930_v42  ;;  %977 = vst.msk [vmem:[%s2127_s29 + $0x138] sm:$0xff] %vm316_vm0, %v931_v9  ;;  %v937_v43 = vmax.f32 %v891_v39, 0.0 }
 0x134   : > { %982 = vst [vmem:[%s2127_s29 + $0x160] sm:$0xff] %v936_v15 }
 0x135   : > { %983 = vst.msk [vmem:[%s2127_s29 + $0x168] sm:$0xff] %vm316_vm0, %v937_v43 }
 0x13b   : > { %v1408_v29 = vpop.eup %1407 }
 0x13c   : > { %v752_v18 = vmul.f32 %v1408_v29, %v729_v32  ;;  %v796_v10 = vmul.f32 %v1435_v33, %v1408_v29  ;;  %v797_v17 = vmul.f32 %v1436_v2, %v1408_v29 }
 0x13e   : > { %v842_v1 = vadd.f32 %v796_v10, %v752_v18  ;;  %v843_v12 = vadd.f32 %v797_v17, %v752_v18 }
 0x140   : > { %v888_v16 = vadd.f32 %v842_v1, %v312_v48  ;;  %v889_v60 = vadd.f32 %v843_v12, %v313_v51  ;;  %990 = sbr.rel (!%p1569_p4) target bundleno = 394 (0x18a), region = 32 }
 0x142   : > { %v934_v57 = vmax.f32 %v888_v16, 0.0  ;;  %v935_v49 = vmax.f32 %v889_v60, 0.0 }
 0x144   : > { %980 = vst [vmem:[%s2127_s29 + $0x150] sm:$0xff] %v934_v57  ;;  %981 = vst.msk [vmem:[%s2127_s29 + $0x158] sm:$0xff] %vm316_vm0, %v935_v49 }
 0x145   : > { %s2587_s30 = smov (!%p993_p8, %s992_s30), 23 }
 0x146   : > { %s1269_s7 = sshll.u32 %s2587_s30, 8 }
 0x147   : > { %p1258_p9 = scmp.eq.s32.totalorder %s1269_s7, 0 }
 0x148   : > { %1437 = sdivrem.u32 (!%p1258_p9), %s2587_s30, 23 }
 0x149   : > { %1003 = sbr.rel (%p1258_p9) target bundleno = 394 (0x18a), region = 36 }
 0x151   : > { %s2363_s8 = spop.drf %1437 }
 0x152   : > { %p1259_p10 = scmp.le.s32.totalorder %s2363_s8, 0 }
 0x153   : > { %s2578_s9 = smov (!%p1259_p10), %s2357_s6  ;;  %s2579_s11 = smov (!%p1259_p10), %s2127_s29 }
 0x154   : > { %1195 = sbr.rel (%p1259_p10) target bundleno = 369 (0x171), region = 87  ;;  %s2372_s12 = smov (!%p1259_p10), 0  }
 0x155   : > { %s2374_s14 = smov (!%p1259_p10), 0  }
 0x159 LB: >> { %v1017_v56 = vld [vmem:[%s1503_s11] sm:$0xff]  ;;  %v1019_v45 = vld [vmem:[%s1503_s11 + $0x10] sm:$0xff]  ;;  %s1109_s15 = sadd.s32 1, %s1507_s12  ;;  %v1063_v38 = vld [vmem:[%s1503_s11 + $0x8] sm:$0xff]  ;;  %s1011_s14 = sadd.s32 1, %s1511_s14   ;;  %s1511_s14 = sphi %s2374_s14, %s1011_s14   ;;  %s1507_s12 = sphi %s2372_s12, %s2582_s12   ;;  %s1503_s11 = sphi %s2579_s11, %s2581_s11   ;;  %s1499_s9 = sphi %s2578_s9, %s2580_s9  }
 0x15a   : >> { %v1021_v5 = vld [vmem:[%s1503_s11 + $0x20] sm:$0xff]  ;;  %1018 = vst [vmem:[%s1499_s9] sm:$0xff] %v1017_v56  ;;  %1020 = vst [vmem:[%s1499_s9 + $0x10] sm:$0xff] %v1019_v45  ;;  %v1023_v21 = vld [vmem:[%s1503_s11 + $0x30] sm:$0xff]  ;;  %p1110_p11 = scmp.ge.s32.totalorder %s1109_s15, %s2363_s8  ;;  %p1010_p12 = scmp.ge.s32.totalorder %s1011_s14, %s2363_s8 }
 0x15b   : >> { %1022 = vst [vmem:[%s1499_s9 + $0x20] sm:$0xff] %v1021_v5  ;;  %v1025_v14 = vld [vmem:[%s1503_s11 + $0x40] sm:$0xff]  ;;  %v1027_v63 = vld [vmem:[%s1503_s11 + $0x50] sm:$0xff]  ;;  %1024 = vst [vmem:[%s1499_s9 + $0x30] sm:$0xff] %v1023_v21 }
 0x15c   : >> { %1026 = vst [vmem:[%s1499_s9 + $0x40] sm:$0xff] %v1025_v14  ;;  %1028 = vst [vmem:[%s1499_s9 + $0x50] sm:$0xff] %v1027_v63  ;;  %v1029_v50 = vld [vmem:[%s1503_s11 + $0x60] sm:$0xff]  ;;  %v1031_v36 = vld [vmem:[%s1503_s11 + $0x70] sm:$0xff]  ;;  %s2589_s15 = smov (%p1110_p11, %s1109_s15), 0 }
 0x15d   : >> { %v1033_v34 = vld [vmem:[%s1503_s11 + $0x80] sm:$0xff]  ;;  %1030 = vst [vmem:[%s1499_s9 + $0x60] sm:$0xff] %v1029_v50  ;;  %1032 = vst [vmem:[%s1499_s9 + $0x70] sm:$0xff] %v1031_v36  ;;  %v1035_v6 = vld [vmem:[%s1503_s11 + $0x90] sm:$0xff]  ;;  %s1112_s17 = smul.u32 368, %s2589_s15  ;;  %s2582_s12 = smov %s2589_s15 }
 0x15e   : >> { %1034 = vst [vmem:[%s1499_s9 + $0x80] sm:$0xff] %v1033_v34  ;;  %v1037_v35 = vld [vmem:[%s1503_s11 + $0xa0] sm:$0xff]  ;;  %v1039_v11 = vld [vmem:[%s1503_s11 + $0xb0] sm:$0xff]  ;;  %1036 = vst [vmem:[%s1499_s9 + $0x90] sm:$0xff] %v1035_v6 }
 0x15f   : >> { %1038 = vst [vmem:[%s1499_s9 + $0xa0] sm:$0xff] %v1037_v35  ;;  %1040 = vst [vmem:[%s1499_s9 + $0xb0] sm:$0xff] %v1039_v11  ;;  %v1041_v3 = vld [vmem:[%s1503_s11 + $0xc0] sm:$0xff]  ;;  %v1043_v41 = vld [vmem:[%s1503_s11 + $0xd0] sm:$0xff]  ;;  %s2436_s18 = scalar_lea.vmem %s2127_s29, %s1112_s17 [#allocation2]   ;;  %s2439_s19 = scalar_lea.vmem %s2357_s6, %s1112_s17  }
 0x160   : >> { %v1045_v61 = vld [vmem:[%s1503_s11 + $0xe0] sm:$0xff]  ;;  %1042 = vst [vmem:[%s1499_s9 + $0xc0] sm:$0xff] %v1041_v3  ;;  %1044 = vst [vmem:[%s1499_s9 + $0xd0] sm:$0xff] %v1043_v41  ;;  %v1047_v37 = vld [vmem:[%s1503_s11 + $0xf0] sm:$0xff] }
 0x161   : >> { %1046 = vst [vmem:[%s1499_s9 + $0xe0] sm:$0xff] %v1045_v61  ;;  %v1049_v25 = vld [vmem:[%s1503_s11 + $0x100] sm:$0xff]  ;;  %v1051_v47 = vld [vmem:[%s1503_s11 + $0x110] sm:$0xff]  ;;  %1048 = vst [vmem:[%s1499_s9 + $0xf0] sm:$0xff] %v1047_v37 }
 0x162   : >> { %1050 = vst [vmem:[%s1499_s9 + $0x100] sm:$0xff] %v1049_v25  ;;  %1052 = vst [vmem:[%s1499_s9 + $0x110] sm:$0xff] %v1051_v47  ;;  %v1053_v30 = vld [vmem:[%s1503_s11 + $0x120] sm:$0xff]  ;;  %v1055_v31 = vld [vmem:[%s1503_s11 + $0x130] sm:$0xff] }
 0x163   : >> { %v1057_v58 = vld [vmem:[%s1503_s11 + $0x140] sm:$0xff]  ;;  %1054 = vst [vmem:[%s1499_s9 + $0x120] sm:$0xff] %v1053_v30  ;;  %1056 = vst [vmem:[%s1499_s9 + $0x130] sm:$0xff] %v1055_v31  ;;  %v1059_v62 = vld [vmem:[%s1503_s11 + $0x150] sm:$0xff] }
 0x164   : >> { %1058 = vst [vmem:[%s1499_s9 + $0x140] sm:$0xff] %v1057_v58  ;;  %v1061_v52 = vld [vmem:[%s1503_s11 + $0x160] sm:$0xff]  ;;  %1060 = vst [vmem:[%s1499_s9 + $0x150] sm:$0xff] %v1059_v62  ;;  %v1065_v26 = vld [vmem:[%s1503_s11 + $0x18] sm:$0xff] }
 0x165   : >> { %1062 = vst [vmem:[%s1499_s9 + $0x160] sm:$0xff] %v1061_v52  ;;  %1064 = vst [vmem:[%s1499_s9 + $0x8] sm:$0xff] %v1063_v38  ;;  %v1067_v54 = vld [vmem:[%s1503_s11 + $0x28] sm:$0xff]  ;;  %v1069_v55 = vld [vmem:[%s1503_s11 + $0x38] sm:$0xff] }
 0x166   : >> { %1066 = vst [vmem:[%s1499_s9 + $0x18] sm:$0xff] %v1065_v26  ;;  %1068 = vst [vmem:[%s1499_s9 + $0x28] sm:$0xff] %v1067_v54  ;;  %v1071_v24 = vld [vmem:[%s1503_s11 + $0x48] sm:$0xff]  ;;  %v1073_v28 = vld [vmem:[%s1503_s11 + $0x58] sm:$0xff] }
 0x167   : >> { %1070 = vst [vmem:[%s1499_s9 + $0x38] sm:$0xff] %v1069_v55  ;;  %v1075_v22 = vld [vmem:[%s1503_s11 + $0x68] sm:$0xff]  ;;  %1072 = vst [vmem:[%s1499_s9 + $0x48] sm:$0xff] %v1071_v24  ;;  %v1077_v23 = vld [vmem:[%s1503_s11 + $0x78] sm:$0xff] }
 0x168   : >> { %1074 = vst [vmem:[%s1499_s9 + $0x58] sm:$0xff] %v1073_v28  ;;  %1076 = vst [vmem:[%s1499_s9 + $0x68] sm:$0xff] %v1075_v22  ;;  %v1079_v59 = vld [vmem:[%s1503_s11 + $0x88] sm:$0xff]  ;;  %v1081_v27 = vld [vmem:[%s1503_s11 + $0x98] sm:$0xff] }
 0x169   : >> { %1078 = vst [vmem:[%s1499_s9 + $0x78] sm:$0xff] %v1077_v23  ;;  %1080 = vst [vmem:[%s1499_s9 + $0x88] sm:$0xff] %v1079_v59  ;;  %v1083_v46 = vld [vmem:[%s1503_s11 + $0xa8] sm:$0xff]  ;;  %v1085_v0 = vld [vmem:[%s1503_s11 + $0xb8] sm:$0xff] }
 0x16a   : >> { %1082 = vst [vmem:[%s1499_s9 + $0x98] sm:$0xff] %v1081_v27  ;;  %v1087_v13 = vld [vmem:[%s1503_s11 + $0xc8] sm:$0xff]  ;;  %1084 = vst [vmem:[%s1499_s9 + $0xa8] sm:$0xff] %v1083_v46  ;;  %v1089_v8 = vld [vmem:[%s1503_s11 + $0xd8] sm:$0xff] }
 0x16b   : >> { %1086 = vst [vmem:[%s1499_s9 + $0xb8] sm:$0xff] %v1085_v0  ;;  %1088 = vst [vmem:[%s1499_s9 + $0xc8] sm:$0xff] %v1087_v13  ;;  %v1091_v19 = vld [vmem:[%s1503_s11 + $0xe8] sm:$0xff]  ;;  %v1093_v44 = vld [vmem:[%s1503_s11 + $0xf8] sm:$0xff] }
 0x16c   : >> { %1090 = vst [vmem:[%s1499_s9 + $0xd8] sm:$0xff] %v1089_v8  ;;  %1092 = vst [vmem:[%s1499_s9 + $0xe8] sm:$0xff] %v1091_v19  ;;  %v1095_v4 = vld [vmem:[%s1503_s11 + $0x108] sm:$0xff]  ;;  %v1097_v7 = vld [vmem:[%s1503_s11 + $0x118] sm:$0xff]  ;;  %1013 = sbr.rel (!%p1010_p12) target bundleno = 345 (0x159), region = 93 }
 0x16d   : >> { %1094 = vst [vmem:[%s1499_s9 + $0xf8] sm:$0xff] %v1093_v44  ;;  %v1099_v53 = vld [vmem:[%s1503_s11 + $0x128] sm:$0xff]  ;;  %1096 = vst [vmem:[%s1499_s9 + $0x108] sm:$0xff] %v1095_v4  ;;  %v1101_v42 = vld [vmem:[%s1503_s11 + $0x138] sm:$0xff] }
 0x16e   : >> { %1098 = vst [vmem:[%s1499_s9 + $0x118] sm:$0xff] %v1097_v7  ;;  %1100 = vst [vmem:[%s1499_s9 + $0x128] sm:$0xff] %v1099_v53  ;;  %v1103_v20 = vld [vmem:[%s1503_s11 + $0x148] sm:$0xff]  ;;  %v1105_v9 = vld [vmem:[%s1503_s11 + $0x158] sm:$0xff] }
 0x16f   : >> { %1102 = vst [vmem:[%s1499_s9 + $0x138] sm:$0xff] %v1101_v42  ;;  %1104 = vst [vmem:[%s1499_s9 + $0x148] sm:$0xff] %v1103_v20  ;;  %v1107_v39 = vld [vmem:[%s1503_s11 + $0x168] sm:$0xff]  ;;  %s2581_s11 = smov %s2436_s18 }
 0x170   : >> { %1106 = vst [vmem:[%s1499_s9 + $0x158] sm:$0xff] %v1105_v9  ;;  %1108 = vst [vmem:[%s1499_s9 + $0x168] sm:$0xff] %v1107_v39  ;;  %s2580_s9 = smov %s2439_s19 }
 0x171 PF: > { %1439 = sdivrem.u32 %s2587_s30, 23 }
 0x172   : > { %s1260_s20 = smul.u32 368, %s2363_s8 }
 0x174   : > { %s2504_s21 = scalar_lea.vmem %s2127_s29, %s1260_s20 [#allocation2]   ;;  %s2507_s22 = scalar_lea.vmem %s2357_s6, %s1260_s20  }
 0x17a   : > { %s1440_s23 = spop.drf %1439 }
 0x17b   : > { %p1262_p13 = scmp.le.s32.totalorder %s1440_s23, 0 }
 0x17c   : > { %s1513_s24 = smov (!%p1262_p13), %s2507_s22   ;;  %s1517_s25 = smov (!%p1262_p13), %s2504_s21  }
 0x17d   : > { %1209 = sbr.rel (%p1262_p13) target bundleno = 394 (0x18a), region = 98  ;;  %s1521_s26 = smov (!%p1262_p13), 0  }
 0x17e   : > { %s1525_s27 = smov (!%p1262_p13), 0  }
 0x182 LB: >> { %v1132_v15 = vld [vmem:[%s1519_s25] sm:$0xff]  ;;  %v1134_v43 = vld [vmem:[%s1519_s25 + $0x8] sm:$0xff]  ;;  %s1136_s28 = sadd.s32 1, %s1523_s26  ;;  %s1126_s27 = sadd.s32 1, %s1527_s27   ;;  %s1527_s27 = sphi %s1525_s27, %s1126_s27   ;;  %s1523_s26 = sphi %s1521_s26, %s1522_s26   ;;  %s1519_s25 = sphi %s1517_s25, %s1141_s25   ;;  %s1515_s24 = sphi %s1513_s24, %s1142_s24  }
 0x183   : >> { %1133 = vst [vmem:[%s1515_s24] sm:$0xff] %v1132_v15  ;;  %1135 = vst [vmem:[%s1515_s24 + $0x8] sm:$0xff] %v1134_v43  ;;  %p1137_p0 = scmp.ge.s32.totalorder %s1136_s28, %s1440_s23  ;;  %p1125_p1 = scmp.ge.s32.totalorder %s1126_s27, %s1440_s23 }
 0x185   : >> { %s2591_s28 = smov (%p1137_p0, %s1136_s28), 0  ;;  %1128 = sbr.rel (!%p1125_p1) target bundleno = 386 (0x182), region = 104 }
 0x186   : >> { %s1263_s29 = sshll.u32 %s2591_s28, 4  ;;  %s1522_s26 = smov %s2591_s28  }
 0x187   : >> { %s1141_s25 = scalar_lea.vmem %s2504_s21, %s1263_s29 [#allocation2]   ;;  %s1142_s24 = scalar_lea.vmem %s2507_s22, %s1263_s29  }
 0x18a PF: > { %p9_p2 = scmp.ge.s32.totalorder %s1559_s13, 6   ;;  %s2583_s9 = smov %s1491_s10 }
 0x18b   : > { %s2584_s10 = smov %s1567_s16  ;;  %s2585_s11 = smov %s1559_s13 }
 0x18c   :  { %11 = sbr.rel (!%p9_p2) target bundleno = 2 (0x2), region = 115 }

</bundles_post_ra>
